<compile_context>
chip_gen: v6e
topology: v6e:2x2x1
jax: 0.10.0
libtpu: 0.0.40
codegen_flags: <defaults>
</compile_context>

<pallas_src>
import math
import jax
import jax.numpy as jnp
from jax.experimental import pallas as pl
from jax.experimental.pallas import tpu as pltpu

LN2 = math.log(2.0)


def ssp(v):
    # numerically stable shifted softplus: softplus(v) - log(2)
    return jnp.maximum(v, 0.0) + jnp.log(1.0 + jnp.exp(-jnp.abs(v))) - LN2


def make_kernel(n_res_interaction, n_res_atomic):
    bf16 = jnp.bfloat16

    def kernel(x_ref, rbf_ref, idx_i_ref, idx_j_ref,
               wk2f_ref, wij_ref, bij_ref,
               riw1_ref, rib1_ref, riw2_ref, rib2_ref,
               wd_ref, bd_ref, u_ref,
               raw1_ref, rab1_ref, raw2_ref, rab2_ref,
               out_ref, acc_ref, dj_ref):
        p = pl.program_id(0)
        N = x_ref.shape[0]
        Fdim = x_ref.shape[1]
        Pt = rbf_ref.shape[0]

        # ---------- step 0: per-atom projections (done once), init accumulator with xi ----------
        @pl.when(p == 0)
        def _():
            xa = ssp(x_ref[...])
            # fused Wi|Wj projection: one [N,F] @ [F,2F] MXU call
            proj = jnp.dot(xa.astype(bf16), wij_ref[...],
                           preferred_element_type=jnp.float32) + bij_ref[...]
            proj = ssp(proj)
            acc_ref[...] = proj[:, :Fdim]               # xi  (accumulator starts at xi)
            dj_ref[...] = proj[:, Fdim:].astype(bf16)   # dj, kept as bf16 MXU operand

        # ---------- every step: messages for this pair tile, segment-sum into acc ----------
        g = jnp.dot(rbf_ref[...].astype(bf16), wk2f_ref[...],
                    preferred_element_type=jnp.float32)             # [Pt, F]

        # gather dj[idx_j] via exact {0,1} bf16 one-hot (native [Pt,N] @ [N,F] matmul)
        # TODO(synk): swap for a DMA/scalar-prefetch row gather when N is large.
        atom_col = jax.lax.broadcasted_iota(jnp.int32, (Pt, N), 1)
        onehot_j = (atom_col == idx_j_ref[...]).astype(jnp.float32).astype(bf16)   # [Pt, N]
        dj_g = jnp.dot(onehot_j, dj_ref[...], preferred_element_type=jnp.float32)  # [Pt, F]

        msgs = (g * dj_g).astype(bf16)                               # [Pt, F]

        # segment-sum over idx_i via [N,Pt] one-hot -> native [N,Pt] @ [Pt,F] matmul
        atom_row = jax.lax.broadcasted_iota(jnp.int32, (N, Pt), 0)
        onehot_i = (atom_row == idx_i_ref[...]).astype(jnp.float32).astype(bf16)   # [N, Pt]
        acc_ref[...] += jnp.dot(onehot_i, msgs, preferred_element_type=jnp.float32)

        # ---------- last step: residual stacks + output update ----------
        @pl.when(p == pl.num_programs(0) - 1)
        def _():
            m = acc_ref[...]                                         # xi + xj
            for r in range(n_res_interaction):
                y = ssp(m)
                h = ssp(jnp.dot(y.astype(bf16), riw1_ref[r],
                                preferred_element_type=jnp.float32) + rib1_ref[r])
                m = m + jnp.dot(h.astype(bf16), riw2_ref[r],
                                preferred_element_type=jnp.float32) + rib2_ref[r]
            m = ssp(m)
            xnew = (u_ref[...] * x_ref[...]
                    + jnp.dot(m.astype(bf16), wd_ref[...],
                              preferred_element_type=jnp.float32) + bd_ref[...])
            for r in range(n_res_atomic):
                y = ssp(xnew)
                h = ssp(jnp.dot(y.astype(bf16), raw1_ref[r],
                                preferred_element_type=jnp.float32) + rab1_ref[r])
                xnew = xnew + jnp.dot(h.astype(bf16), raw2_ref[r],
                                      preferred_element_type=jnp.float32) + rab2_ref[r]
            out_ref[...] = xnew

    return kernel


def interaction_block(x, rbf, idx_i, idx_j, params,
                      n_res_interaction, n_res_atomic, *, p_tile=128):
    (wk2f, wi, bi, wj, bj,
     riw1, rib1, riw2, rib2,
     wd, bd, u,
     raw1, rab1, raw2, rab2) = params

    N, Fdim = x.shape
    P, K = rbf.shape
    bf16 = jnp.bfloat16

    # pad atoms to a sublane multiple and pairs to a tile multiple
    N_pad = ((N + 7) // 8) * 8
    P_pad = ((P + p_tile - 1) // p_tile) * p_tile
    x_p = jnp.pad(x, ((0, N_pad - N), (0, 0)))
    rbf_p = jnp.pad(rbf, ((0, P_pad - P), (0, 0)))
    pad_idx = jnp.full((P_pad - P,), N_pad, jnp.int32)     # out-of-range -> zero one-hot row
    idx_i_p = jnp.concatenate([idx_i.astype(jnp.int32), pad_idx]).reshape(1, P_pad)   # lane-major
    idx_j_p = jnp.concatenate([idx_j.astype(jnp.int32), pad_idx]).reshape(P_pad, 1)   # sublane-major

    # fuse Wi|Wj; pre-cast all MXU weight operands to bf16 (f32 accumulation in-kernel)
    wij = jnp.concatenate([wi, wj], axis=1).astype(bf16)   # [F, 2F]
    bij = jnp.concatenate([bi, bj], axis=1)                # [1, 2F] f32

    args = (x_p, rbf_p, idx_i_p, idx_j_p,
            wk2f.astype(bf16), wij, bij,
            riw1.astype(bf16), rib1, riw2.astype(bf16), rib2,
            wd.astype(bf16), bd, u,
            raw1.astype(bf16), rab1, raw2.astype(bf16), rab2)

    def const_spec(a):  # full-array block, constant index -> DMA'd once, stays resident
        nd = a.ndim
        return pl.BlockSpec(a.shape, lambda p, _n=nd: (0,) * _n)

    in_specs = [
        const_spec(x_p),
        pl.BlockSpec((p_tile, K), lambda p: (p, 0)),       # rbf pair tile
        pl.BlockSpec((1, p_tile), lambda p: (0, p)),       # idx_i tile (lane-major)
        pl.BlockSpec((p_tile, 1), lambda p: (p, 0)),       # idx_j tile (sublane-major)
    ] + [const_spec(a) for a in args[4:]]

    out = pl.pallas_call(
        make_kernel(n_res_interaction, n_res_atomic),
        out_shape=jax.ShapeDtypeStruct((N_pad, Fdim), jnp.float32),
        grid=(P_pad // p_tile,),
        in_specs=in_specs,
        out_specs=const_spec(x_p),
        scratch_shapes=[pltpu.VMEM((N_pad, Fdim), jnp.float32),   # xj accumulator (starts at xi)
                        pltpu.VMEM((N_pad, Fdim), bf16)],          # dj, resident across pair tiles
        compiler_params=pltpu.CompilerParams(
            dimension_semantics=("arbitrary",),        # reduction over pair tiles
            vmem_limit_bytes=32 * 1024 * 1024),        # safe on v7x (64 MiB physical VMEM)
    )(*args)
    return out[:N]


# ---------------- pure-JAX reference (f32) for correctness check ----------------
def reference_forward(x, rbf, idx_i, idx_j, params, n_res_interaction, n_res_atomic):
    (wk2f, wi, bi, wj, bj,
     riw1, rib1, riw2, rib2,
     wd, bd, u,
     raw1, rab1, raw2, rab2) = params

    xa = ssp(x)
    g = rbf @ wk2f
    xi = ssp(xa @ wi + bi)
    dj = ssp(xa @ wj + bj)
    msgs = g * dj[idx_j]
    xj = jnp.zeros_like(x).at[idx_i].add(msgs)
    m = xi + xj
    for r in range(n_res_interaction):
        y = ssp(m)
        h = ssp(y @ riw1[r] + rib1[r])
        m = m + h @ riw2[r] + rib2[r]
    m = ssp(m)
    xnew = u * x + m @ wd + bd
    for r in range(n_res_atomic):
        y = ssp(xnew)
        h = ssp(y @ raw1[r] + rab1[r])
        xnew = xnew + h @ raw2[r] + rab2[r]
    return xnew


def make_params(key, K, Fdim, num_residual_atomic, num_residual_interaction):
    ks = jax.random.split(key, 16)
    s = 0.05
    wk2f = s * jax.random.normal(ks[0], (K, Fdim), jnp.float32)
    wi = s * jax.random.normal(ks[1], (Fdim, Fdim), jnp.float32)
    bi = s * jax.random.normal(ks[2], (1, Fdim), jnp.float32)
    wj = s * jax.random.normal(ks[3], (Fdim, Fdim), jnp.float32)
    bj = s * jax.random.normal(ks[4], (1, Fdim), jnp.float32)
    # stacks sized max(n,1); when n==0 the extra slot is an unused placeholder (kernel loops
    # over the true count, so zero residual layers really applies zero layers).
    Ri = max(num_residual_interaction, 1)
    Ra = max(num_residual_atomic, 1)
    riw1 = s * jax.random.normal(ks[5], (Ri, Fdim, Fdim), jnp.float32)
    rib1 = s * jax.random.normal(ks[6], (Ri, 1, Fdim), jnp.float32)
    riw2 = s * jax.random.normal(ks[7], (Ri, Fdim, Fdim), jnp.float32)
    rib2 = s * jax.random.normal(ks[8], (Ri, 1, Fdim), jnp.float32)
    wd = s * jax.random.normal(ks[9], (Fdim, Fdim), jnp.float32)
    bd = s * jax.random.normal(ks[10], (1, Fdim), jnp.float32)
    u = jnp.ones((1, Fdim), jnp.float32)
    raw1 = s * jax.random.normal(ks[11], (Ra, Fdim, Fdim), jnp.float32)
    rab1 = s * jax.random.normal(ks[12], (Ra, 1, Fdim), jnp.float32)
    raw2 = s * jax.random.normal(ks[13], (Ra, Fdim, Fdim), jnp.float32)
    rab2 = s * jax.random.normal(ks[14], (Ra, 1, Fdim), jnp.float32)
    return (wk2f, wi, bi, wj, bj,
            riw1, rib1, riw2, rib2,
            wd, bd, u,
            raw1, rab1, raw2, rab2)


if __name__ == "__main__":
    # N atoms, F features (lane-dense, PhysNet default 128), K rbf, P atom pairs
    N, Fdim, K, P = 16, 128, 64, 320
    num_residual_atomic = 2
    num_residual_interaction = 1

    key = jax.random.PRNGKey(0)
    k1, k2, k3, k4, kp = jax.random.split(key, 5)

    x = jax.random.normal(k1, (N, Fdim), jnp.float32)
    rbf = jax.random.uniform(k2, (P, K), jnp.float32)
    idx_i = jax.random.randint(k3, (P,), 0, N, jnp.int32)
    idx_j = jax.random.randint(k4, (P,), 0, N, jnp.int32)

    params = make_params(kp, K, Fdim, num_residual_atomic, num_residual_interaction)

    out = interaction_block(x, rbf, idx_i, idx_j, params,
                            num_residual_interaction, num_residual_atomic)
    out = jax.block_until_ready(out)

    ref = reference_forward(x, rbf, idx_i, idx_j, params,
                            num_residual_interaction, num_residual_atomic)
    assert out.shape == (N, Fdim)
    # kernel uses bf16 MXU operands with f32 accumulation -> compare at bf16-level tolerance
    err = float(jnp.max(jnp.abs(out - ref)))
    assert jnp.allclose(out, ref, atol=3e-2, rtol=3e-2), f"mismatch vs reference, max abs err {err}"

    print("KERNEL_OK")
</pallas_src>

<mosaic_0001>
module attributes {stable_mosaic.version = 11 : i64} {
  func.func @kernel(%arg0: i32, %arg1: memref<16x128xf32, #tpu.memory_space<vmem>>, %arg2: memref<128x64xf32, #tpu.memory_space<vmem>>, %arg3: memref<1x128xi32, #tpu.memory_space<vmem>>, %arg4: memref<128x1xi32, #tpu.memory_space<vmem>>, %arg5: memref<64x128xbf16, #tpu.memory_space<vmem>>, %arg6: memref<128x256xbf16, #tpu.memory_space<vmem>>, %arg7: memref<1x256xf32, #tpu.memory_space<vmem>>, %arg8: memref<1x128x128xbf16, #tpu.memory_space<vmem>>, %arg9: memref<1x1x128xf32, #tpu.memory_space<vmem>>, %arg10: memref<1x128x128xbf16, #tpu.memory_space<vmem>>, %arg11: memref<1x1x128xf32, #tpu.memory_space<vmem>>, %arg12: memref<128x128xbf16, #tpu.memory_space<vmem>>, %arg13: memref<1x128xf32, #tpu.memory_space<vmem>>, %arg14: memref<1x128xf32, #tpu.memory_space<vmem>>, %arg15: memref<2x128x128xbf16, #tpu.memory_space<vmem>>, %arg16: memref<2x1x128xf32, #tpu.memory_space<vmem>>, %arg17: memref<2x128x128xbf16, #tpu.memory_space<vmem>>, %arg18: memref<2x1x128xf32, #tpu.memory_space<vmem>>, %arg19: memref<16x128xf32, #tpu.memory_space<vmem>>, %arg20: memref<16x128xf32, #tpu.memory_space<vmem>>, %arg21: memref<16x128xbf16, #tpu.memory_space<vmem>>) attributes {dimension_semantics = [#tpu.dimension_semantics<arbitrary>], iteration_bounds = array<i64: 3>, scalar_prefetch = 0 : i64, scratch_operands = 2 : i64, tpu.core_type = #tpu.core_type<tc>, window_params = [{pipeline_mode = #tpu.pipeline_mode<synchronous>, transform_indices = @transform_0, window_bounds = array<i64: 16, 128>}, {transform_indices = @transform_1, window_bounds = array<i64: 128, 64>}, {transform_indices = @transform_2, window_bounds = array<i64: 1, 128>}, {transform_indices = @transform_3, window_bounds = array<i64: 128, 1>}, {pipeline_mode = #tpu.pipeline_mode<synchronous>, transform_indices = @transform_4, window_bounds = array<i64: 64, 128>}, {pipeline_mode = #tpu.pipeline_mode<synchronous>, transform_indices = @transform_5, window_bounds = array<i64: 128, 256>}, {pipeline_mode = #tpu.pipeline_mode<synchronous>, transform_indices = @transform_6, window_bounds = array<i64: 1, 256>}, {pipeline_mode = #tpu.pipeline_mode<synchronous>, transform_indices = @transform_7, window_bounds = array<i64: 1, 128, 128>}, {pipeline_mode = #tpu.pipeline_mode<synchronous>, transform_indices = @transform_8, window_bounds = array<i64: 1, 1, 128>}, {pipeline_mode = #tpu.pipeline_mode<synchronous>, transform_indices = @transform_9, window_bounds = array<i64: 1, 128, 128>}, {pipeline_mode = #tpu.pipeline_mode<synchronous>, transform_indices = @transform_10, window_bounds = array<i64: 1, 1, 128>}, {pipeline_mode = #tpu.pipeline_mode<synchronous>, transform_indices = @transform_11, window_bounds = array<i64: 128, 128>}, {pipeline_mode = #tpu.pipeline_mode<synchronous>, transform_indices = @transform_12, window_bounds = array<i64: 1, 128>}, {pipeline_mode = #tpu.pipeline_mode<synchronous>, transform_indices = @transform_13, window_bounds = array<i64: 1, 128>}, {pipeline_mode = #tpu.pipeline_mode<synchronous>, transform_indices = @transform_14, window_bounds = array<i64: 2, 128, 128>}, {pipeline_mode = #tpu.pipeline_mode<synchronous>, transform_indices = @transform_15, window_bounds = array<i64: 2, 1, 128>}, {pipeline_mode = #tpu.pipeline_mode<synchronous>, transform_indices = @transform_16, window_bounds = array<i64: 2, 128, 128>}, {pipeline_mode = #tpu.pipeline_mode<synchronous>, transform_indices = @transform_17, window_bounds = array<i64: 2, 1, 128>}, {pipeline_mode = #tpu.pipeline_mode<synchronous>, transform_indices = @transform_18, window_bounds = array<i64: 16, 128>}]} {
    %c0_i32 = arith.constant 0 : i32
    %0 = arith.cmpi eq, %arg0, %c0_i32 : i32
    %1 = arith.extui %0 : i1 to i32
    %c0_i32_0 = arith.constant 0 : i32
    %2 = arith.cmpi ne, %1, %c0_i32_0 : i32
    scf.if %2 {
      %c0_17 = arith.constant 0 : index
      %c0_18 = arith.constant 0 : index
      %32 = vector.load %arg1[%c0_17, %c0_18] : memref<16x128xf32, #tpu.memory_space<vmem>>, vector<16x128xf32>
      %cst_19 = arith.constant 0.000000e+00 : f32
      %33 = vector.broadcast %cst_19 : f32 to vector<16x128xf32>
      %34 = arith.maximumf %32, %33 : vector<16x128xf32>
      %35 = math.absf %32 : vector<16x128xf32>
      %cst_20 = arith.constant 0.000000e+00 : f32
      %36 = vector.broadcast %cst_20 : f32 to vector<16x128xf32>
      %37 = arith.subf %36, %35 : vector<16x128xf32>
      %38 = math.exp %37 : vector<16x128xf32>
      %cst_21 = arith.constant 1.000000e+00 : f32
      %39 = vector.broadcast %cst_21 : f32 to vector<16x128xf32>
      %40 = arith.addf %39, %38 : vector<16x128xf32>
      %41 = math.log %40 : vector<16x128xf32>
      %42 = arith.addf %34, %41 : vector<16x128xf32>
      %cst_22 = arith.constant 0.693147182 : f32
      %43 = vector.broadcast %cst_22 : f32 to vector<16x128xf32>
      %44 = arith.subf %42, %43 : vector<16x128xf32>
      %45 = arith.truncf %44 : vector<16x128xf32> to vector<16x128xbf16>
      %c0_23 = arith.constant 0 : index
      %c0_24 = arith.constant 0 : index
      %46 = vector.load %arg6[%c0_23, %c0_24] : memref<128x256xbf16, #tpu.memory_space<vmem>>, vector<128x256xbf16>
      %cst_25 = arith.constant dense<0.000000e+00> : vector<16x256xf32>
      %47 = tpu.matmul %45, %46, %cst_25 {dimension_numbers = #tpu.dot_dimension_numbers<[1], [0], [0], [1], [0, 0, 1, 1], [], []>} : vector<16x128xbf16>, vector<128x256xbf16>, vector<16x256xf32> -> vector<16x256xf32>
      %c0_26 = arith.constant 0 : index
      %c0_27 = arith.constant 0 : index
      %48 = vector.load %arg7[%c0_26, %c0_27] : memref<1x256xf32, #tpu.memory_space<vmem>>, vector<1x256xf32>
      %49 = vector.broadcast %48 : vector<1x256xf32> to vector<16x256xf32>
      %50 = arith.addf %47, %49 : vector<16x256xf32>
      %cst_28 = arith.constant 0.000000e+00 : f32
      %51 = vector.broadcast %cst_28 : f32 to vector<16x256xf32>
      %52 = arith.maximumf %50, %51 : vector<16x256xf32>
      %53 = math.absf %50 : vector<16x256xf32>
      %cst_29 = arith.constant 0.000000e+00 : f32
      %54 = vector.broadcast %cst_29 : f32 to vector<16x256xf32>
      %55 = arith.subf %54, %53 : vector<16x256xf32>
      %56 = math.exp %55 : vector<16x256xf32>
      %cst_30 = arith.constant 1.000000e+00 : f32
      %57 = vector.broadcast %cst_30 : f32 to vector<16x256xf32>
      %58 = arith.addf %57, %56 : vector<16x256xf32>
      %59 = math.log %58 : vector<16x256xf32>
      %60 = arith.addf %52, %59 : vector<16x256xf32>
      %cst_31 = arith.constant 0.693147182 : f32
      %61 = vector.broadcast %cst_31 : f32 to vector<16x256xf32>
      %62 = arith.subf %60, %61 : vector<16x256xf32>
      %63 = vector.extract_strided_slice %62 {offsets = [0, 0], sizes = [16, 128], strides = [1, 1]} : vector<16x256xf32> to vector<16x128xf32>
      %c0_32 = arith.constant 0 : index
      %c0_33 = arith.constant 0 : index
      %64 = vector.load %arg20[%c0_32, %c0_33] : memref<16x128xf32, #tpu.memory_space<vmem>>, vector<16x128xf32>
      tpu.vector_store %arg20[%c0_32, %c0_33], %63 {strides = array<i32>} : memref<16x128xf32, #tpu.memory_space<vmem>>, vector<16x128xf32>,
      %65 = vector.extract_strided_slice %62 {offsets = [0, 128], sizes = [16, 128], strides = [1, 1]} : vector<16x256xf32> to vector<16x128xf32>
      %66 = arith.truncf %65 : vector<16x128xf32> to vector<16x128xbf16>
      %c0_34 = arith.constant 0 : index
      %c0_35 = arith.constant 0 : index
      %67 = vector.load %arg21[%c0_34, %c0_35] : memref<16x128xbf16, #tpu.memory_space<vmem>>, vector<16x128xbf16>
      tpu.vector_store %arg21[%c0_34, %c0_35], %66 {strides = array<i32>} : memref<16x128xbf16, #tpu.memory_space<vmem>>, vector<16x128xbf16>,
    } else {
    }
    %c0 = arith.constant 0 : index
    %c0_1 = arith.constant 0 : index
    %3 = vector.load %arg2[%c0, %c0_1] : memref<128x64xf32, #tpu.memory_space<vmem>>, vector<128x64xf32>
    %4 = arith.truncf %3 : vector<128x64xf32> to vector<128x64xbf16>
    %c0_2 = arith.constant 0 : index
    %c0_3 = arith.constant 0 : index
    %5 = vector.load %arg5[%c0_2, %c0_3] : memref<64x128xbf16, #tpu.memory_space<vmem>>, vector<64x128xbf16>
    %cst = arith.constant dense<0.000000e+00> : vector<128x128xf32>
    %6 = tpu.matmul %4, %5, %cst {dimension_numbers = #tpu.dot_dimension_numbers<[1], [0], [0], [1], [0, 0, 1, 1], [], []>} : vector<128x64xbf16>, vector<64x128xbf16>, vector<128x128xf32> -> vector<128x128xf32>
    %7 = tpu.iota {dimensions = array<i32: 1>} : vector<128x16xi32>
    %c0_4 = arith.constant 0 : index
    %c0_5 = arith.constant 0 : index
    %8 = vector.load %arg4[%c0_4, %c0_5] : memref<128x1xi32, #tpu.memory_space<vmem>>, vector<128x1xi32>
    %9 = vector.broadcast %8 : vector<128x1xi32> to vector<128x16xi32>
    %10 = arith.cmpi eq, %7, %9 : vector<128x16xi32>
    %11 = arith.extui %10 : vector<128x16xi1> to vector<128x16xi32>
    %12 = arith.sitofp %11 : vector<128x16xi32> to vector<128x16xf32>
    %13 = arith.truncf %12 : vector<128x16xf32> to vector<128x16xbf16>
    %c0_6 = arith.constant 0 : index
    %c0_7 = arith.constant 0 : index
    %14 = vector.load %arg21[%c0_6, %c0_7] : memref<16x128xbf16, #tpu.memory_space<vmem>>, vector<16x128xbf16>
    %cst_8 = arith.constant dense<0.000000e+00> : vector<128x128xf32>
    %15 = tpu.matmul %13, %14, %cst_8 {dimension_numbers = #tpu.dot_dimension_numbers<[1], [0], [0], [1], [0, 0, 1, 1], [], []>} : vector<128x16xbf16>, vector<16x128xbf16>, vector<128x128xf32> -> vector<128x128xf32>
    %16 = arith.mulf %6, %15 : vector<128x128xf32>
    %17 = arith.truncf %16 : vector<128x128xf32> to vector<128x128xbf16>
    %18 = tpu.iota {dimensions = array<i32: 0>} : vector<16x128xi32>
    %c0_9 = arith.constant 0 : index
    %c0_10 = arith.constant 0 : index
    %19 = vector.load %arg3[%c0_9, %c0_10] : memref<1x128xi32, #tpu.memory_space<vmem>>, vector<1x128xi32>
    %20 = vector.broadcast %19 : vector<1x128xi32> to vector<16x128xi32>
    %21 = arith.cmpi eq, %18, %20 : vector<16x128xi32>
    %22 = arith.extui %21 : vector<16x128xi1> to vector<16x128xi32>
    %23 = arith.sitofp %22 : vector<16x128xi32> to vector<16x128xf32>
    %24 = arith.truncf %23 : vector<16x128xf32> to vector<16x128xbf16>
    %c0_11 = arith.constant 0 : index
    %c0_12 = arith.constant 0 : index
    %25 = vector.load %arg20[%c0_11, %c0_12] : memref<16x128xf32, #tpu.memory_space<vmem>>, vector<16x128xf32>
    %cst_13 = arith.constant dense<0.000000e+00> : vector<16x128xf32>
    %26 = tpu.matmul %24, %17, %cst_13 {dimension_numbers = #tpu.dot_dimension_numbers<[1], [0], [0], [1], [0, 0, 1, 1], [], []>} : vector<16x128xbf16>, vector<128x128xbf16>, vector<16x128xf32> -> vector<16x128xf32>
    %27 = arith.addf %25, %26 : vector<16x128xf32>
    %c0_14 = arith.constant 0 : index
    %c0_15 = arith.constant 0 : index
    %28 = vector.load %arg20[%c0_14, %c0_15] : memref<16x128xf32, #tpu.memory_space<vmem>>, vector<16x128xf32>
    tpu.vector_store %arg20[%c0_14, %c0_15], %27 {strides = array<i32>} : memref<16x128xf32, #tpu.memory_space<vmem>>, vector<16x128xf32>,
    %c2_i32 = arith.constant 2 : i32
    %29 = arith.cmpi eq, %arg0, %c2_i32 : i32
    %30 = arith.extui %29 : i1 to i32
    %c0_i32_16 = arith.constant 0 : i32
    %31 = arith.cmpi ne, %30, %c0_i32_16 : i32
    scf.if %31 {
      %c0_17 = arith.constant 0 : index
      %c0_18 = arith.constant 0 : index
      %32 = vector.load %arg20[%c0_17, %c0_18] : memref<16x128xf32, #tpu.memory_space<vmem>>, vector<16x128xf32>
      %cst_19 = arith.constant 0.000000e+00 : f32
      %33 = vector.broadcast %cst_19 : f32 to vector<16x128xf32>
      %34 = arith.maximumf %32, %33 : vector<16x128xf32>
      %35 = math.absf %32 : vector<16x128xf32>
      %cst_20 = arith.constant 0.000000e+00 : f32
      %36 = vector.broadcast %cst_20 : f32 to vector<16x128xf32>
      %37 = arith.subf %36, %35 : vector<16x128xf32>
      %38 = math.exp %37 : vector<16x128xf32>
      %cst_21 = arith.constant 1.000000e+00 : f32
      %39 = vector.broadcast %cst_21 : f32 to vector<16x128xf32>
      %40 = arith.addf %39, %38 : vector<16x128xf32>
      %41 = math.log %40 : vector<16x128xf32>
      %42 = arith.addf %34, %41 : vector<16x128xf32>
      %cst_22 = arith.constant 0.693147182 : f32
      %43 = vector.broadcast %cst_22 : f32 to vector<16x128xf32>
      %44 = arith.subf %42, %43 : vector<16x128xf32>
      %45 = arith.truncf %44 : vector<16x128xf32> to vector<16x128xbf16>
      %c0_23 = arith.constant 0 : index
      %c0_24 = arith.constant 0 : index
      %c0_25 = arith.constant 0 : index
      %46 = vector.load %arg8[%c0_23, %c0_24, %c0_25] : memref<1x128x128xbf16, #tpu.memory_space<vmem>>, vector<1x128x128xbf16>
      %47 = vector.shape_cast %46 : vector<1x128x128xbf16> to vector<128x128xbf16>
      %cst_26 = arith.constant dense<0.000000e+00> : vector<16x128xf32>
      %48 = tpu.matmul %45, %47, %cst_26 {dimension_numbers = #tpu.dot_dimension_numbers<[1], [0], [0], [1], [0, 0, 1, 1], [], []>} : vector<16x128xbf16>, vector<128x128xbf16>, vector<16x128xf32> -> vector<16x128xf32>
      %c0_27 = arith.constant 0 : index
      %c0_28 = arith.constant 0 : index
      %c0_29 = arith.constant 0 : index
      %49 = vector.load %arg9[%c0_27, %c0_28, %c0_29] : memref<1x1x128xf32, #tpu.memory_space<vmem>>, vector<1x1x128xf32>
      %50 = vector.shape_cast %49 : vector<1x1x128xf32> to vector<1x128xf32>
      %51 = vector.broadcast %50 : vector<1x128xf32> to vector<16x128xf32>
      %52 = arith.addf %48, %51 : vector<16x128xf32>
      %cst_30 = arith.constant 0.000000e+00 : f32
      %53 = vector.broadcast %cst_30 : f32 to vector<16x128xf32>
      %54 = arith.maximumf %52, %53 : vector<16x128xf32>
      %55 = math.absf %52 : vector<16x128xf32>
      %cst_31 = arith.constant 0.000000e+00 : f32
      %56 = vector.broadcast %cst_31 : f32 to vector<16x128xf32>
      %57 = arith.subf %56, %55 : vector<16x128xf32>
      %58 = math.exp %57 : vector<16x128xf32>
      %cst_32 = arith.constant 1.000000e+00 : f32
      %59 = vector.broadcast %cst_32 : f32 to vector<16x128xf32>
      %60 = arith.addf %59, %58 : vector<16x128xf32>
      %61 = math.log %60 : vector<16x128xf32>
      %62 = arith.addf %54, %61 : vector<16x128xf32>
      %cst_33 = arith.constant 0.693147182 : f32
      %63 = vector.broadcast %cst_33 : f32 to vector<16x128xf32>
      %64 = arith.subf %62, %63 : vector<16x128xf32>
      %65 = arith.truncf %64 : vector<16x128xf32> to vector<16x128xbf16>
      %c0_34 = arith.constant 0 : index
      %c0_35 = arith.constant 0 : index
      %c0_36 = arith.constant 0 : index
      %66 = vector.load %arg10[%c0_34, %c0_35, %c0_36] : memref<1x128x128xbf16, #tpu.memory_space<vmem>>, vector<1x128x128xbf16>
      %67 = vector.shape_cast %66 : vector<1x128x128xbf16> to vector<128x128xbf16>
      %cst_37 = arith.constant dense<0.000000e+00> : vector<16x128xf32>
      %68 = tpu.matmul %65, %67, %cst_37 {dimension_numbers = #tpu.dot_dimension_numbers<[1], [0], [0], [1], [0, 0, 1, 1], [], []>} : vector<16x128xbf16>, vector<128x128xbf16>, vector<16x128xf32> -> vector<16x128xf32>
      %69 = arith.addf %32, %68 : vector<16x128xf32>
      %c0_38 = arith.constant 0 : index
      %c0_39 = arith.constant 0 : index
      %c0_40 = arith.constant 0 : index
      %70 = vector.load %arg11[%c0_38, %c0_39, %c0_40] : memref<1x1x128xf32, #tpu.memory_space<vmem>>, vector<1x1x128xf32>
      %71 = vector.shape_cast %70 : vector<1x1x128xf32> to vector<1x128xf32>
      %72 = vector.broadcast %71 : vector<1x128xf32> to vector<16x128xf32>
      %73 = arith.addf %69, %72 : vector<16x128xf32>
      %cst_41 = arith.constant 0.000000e+00 : f32
      %74 = vector.broadcast %cst_41 : f32 to vector<16x128xf32>
      %75 = arith.maximumf %73, %74 : vector<16x128xf32>
      %76 = math.absf %73 : vector<16x128xf32>
      %cst_42 = arith.constant 0.000000e+00 : f32
      %77 = vector.broadcast %cst_42 : f32 to vector<16x128xf32>
      %78 = arith.subf %77, %76 : vector<16x128xf32>
      %79 = math.exp %78 : vector<16x128xf32>
      %cst_43 = arith.constant 1.000000e+00 : f32
      %80 = vector.broadcast %cst_43 : f32 to vector<16x128xf32>
      %81 = arith.addf %80, %79 : vector<16x128xf32>
      %82 = math.log %81 : vector<16x128xf32>
      %83 = arith.addf %75, %82 : vector<16x128xf32>
      %cst_44 = arith.constant 0.693147182 : f32
      %84 = vector.broadcast %cst_44 : f32 to vector<16x128xf32>
      %85 = arith.subf %83, %84 : vector<16x128xf32>
      %c0_45 = arith.constant 0 : index
      %c0_46 = arith.constant 0 : index
      %86 = vector.load %arg14[%c0_45, %c0_46] : memref<1x128xf32, #tpu.memory_space<vmem>>, vector<1x128xf32>
      %c0_47 = arith.constant 0 : index
      %c0_48 = arith.constant 0 : index
      %87 = vector.load %arg1[%c0_47, %c0_48] : memref<16x128xf32, #tpu.memory_space<vmem>>, vector<16x128xf32>
      %88 = vector.broadcast %86 : vector<1x128xf32> to vector<16x128xf32>
      %89 = arith.mulf %88, %87 : vector<16x128xf32>
      %90 = arith.truncf %85 : vector<16x128xf32> to vector<16x128xbf16>
      %c0_49 = arith.constant 0 : index
      %c0_50 = arith.constant 0 : index
      %91 = vector.load %arg12[%c0_49, %c0_50] : memref<128x128xbf16, #tpu.memory_space<vmem>>, vector<128x128xbf16>
      %cst_51 = arith.constant dense<0.000000e+00> : vector<16x128xf32>
      %92 = tpu.matmul %90, %91, %cst_51 {dimension_numbers = #tpu.dot_dimension_numbers<[1], [0], [0], [1], [0, 0, 1, 1], [], []>} : vector<16x128xbf16>, vector<128x128xbf16>, vector<16x128xf32> -> vector<16x128xf32>
      %93 = arith.addf %89, %92 : vector<16x128xf32>
      %c0_52 = arith.constant 0 : index
      %c0_53 = arith.constant 0 : index
      %94 = vector.load %arg13[%c0_52, %c0_53] : memref<1x128xf32, #tpu.memory_space<vmem>>, vector<1x128xf32>
      %95 = vector.broadcast %94 : vector<1x128xf32> to vector<16x128xf32>
      %96 = arith.addf %93, %95 : vector<16x128xf32>
      %cst_54 = arith.constant 0.000000e+00 : f32
      %97 = vector.broadcast %cst_54 : f32 to vector<16x128xf32>
      %98 = arith.maximumf %96, %97 : vector<16x128xf32>
      %99 = math.absf %96 : vector<16x128xf32>
      %cst_55 = arith.constant 0.000000e+00 : f32
      %100 = vector.broadcast %cst_55 : f32 to vector<16x128xf32>
      %101 = arith.subf %100, %99 : vector<16x128xf32>
      %102 = math.exp %101 : vector<16x128xf32>
      %cst_56 = arith.constant 1.000000e+00 : f32
      %103 = vector.broadcast %cst_56 : f32 to vector<16x128xf32>
      %104 = arith.addf %103, %102 : vector<16x128xf32>
      %105 = math.log %104 : vector<16x128xf32>
      %106 = arith.addf %98, %105 : vector<16x128xf32>
      %cst_57 = arith.constant 0.693147182 : f32
      %107 = vector.broadcast %cst_57 : f32 to vector<16x128xf32>
      %108 = arith.subf %106, %107 : vector<16x128xf32>
      %109 = arith.truncf %108 : vector<16x128xf32> to vector<16x128xbf16>
      %c0_58 = arith.constant 0 : index
      %c0_59 = arith.constant 0 : index
      %c0_60 = arith.constant 0 : index
      %110 = vector.load %arg15[%c0_58, %c0_59, %c0_60] : memref<2x128x128xbf16, #tpu.memory_space<vmem>>, vector<1x128x128xbf16>
      %111 = vector.shape_cast %110 : vector<1x128x128xbf16> to vector<128x128xbf16>
      %cst_61 = arith.constant dense<0.000000e+00> : vector<16x128xf32>
      %112 = tpu.matmul %109, %111, %cst_61 {dimension_numbers = #tpu.dot_dimension_numbers<[1], [0], [0], [1], [0, 0, 1, 1], [], []>} : vector<16x128xbf16>, vector<128x128xbf16>, vector<16x128xf32> -> vector<16x128xf32>
      %c0_62 = arith.constant 0 : index
      %c0_63 = arith.constant 0 : index
      %c0_64 = arith.constant 0 : index
      %113 = vector.load %arg16[%c0_62, %c0_63, %c0_64] : memref<2x1x128xf32, #tpu.memory_space<vmem>>, vector<1x1x128xf32>
      %114 = vector.shape_cast %113 : vector<1x1x128xf32> to vector<1x128xf32>
      %115 = vector.broadcast %114 : vector<1x128xf32> to vector<16x128xf32>
      %116 = arith.addf %112, %115 : vector<16x128xf32>
      %cst_65 = arith.constant 0.000000e+00 : f32
      %117 = vector.broadcast %cst_65 : f32 to vector<16x128xf32>
      %118 = arith.maximumf %116, %117 : vector<16x128xf32>
      %119 = math.absf %116 : vector<16x128xf32>
      %cst_66 = arith.constant 0.000000e+00 : f32
      %120 = vector.broadcast %cst_66 : f32 to vector<16x128xf32>
      %121 = arith.subf %120, %119 : vector<16x128xf32>
      %122 = math.exp %121 : vector<16x128xf32>
      %cst_67 = arith.constant 1.000000e+00 : f32
      %123 = vector.broadcast %cst_67 : f32 to vector<16x128xf32>
      %124 = arith.addf %123, %122 : vector<16x128xf32>
      %125 = math.log %124 : vector<16x128xf32>
      %126 = arith.addf %118, %125 : vector<16x128xf32>
      %cst_68 = arith.constant 0.693147182 : f32
      %127 = vector.broadcast %cst_68 : f32 to vector<16x128xf32>
      %128 = arith.subf %126, %127 : vector<16x128xf32>
      %129 = arith.truncf %128 : vector<16x128xf32> to vector<16x128xbf16>
      %c0_69 = arith.constant 0 : index
      %c0_70 = arith.constant 0 : index
      %c0_71 = arith.constant 0 : index
      %130 = vector.load %arg17[%c0_69, %c0_70, %c0_71] : memref<2x128x128xbf16, #tpu.memory_space<vmem>>, vector<1x128x128xbf16>
      %131 = vector.shape_cast %130 : vector<1x128x128xbf16> to vector<128x128xbf16>
      %cst_72 = arith.constant dense<0.000000e+00> : vector<16x128xf32>
      %132 = tpu.matmul %129, %131, %cst_72 {dimension_numbers = #tpu.dot_dimension_numbers<[1], [0], [0], [1], [0, 0, 1, 1], [], []>} : vector<16x128xbf16>, vector<128x128xbf16>, vector<16x128xf32> -> vector<16x128xf32>
      %133 = arith.addf %96, %132 : vector<16x128xf32>
      %c0_73 = arith.constant 0 : index
      %c0_74 = arith.constant 0 : index
      %c0_75 = arith.constant 0 : index
      %134 = vector.load %arg18[%c0_73, %c0_74, %c0_75] : memref<2x1x128xf32, #tpu.memory_space<vmem>>, vector<1x1x128xf32>
      %135 = vector.shape_cast %134 : vector<1x1x128xf32> to vector<1x128xf32>
      %136 = vector.broadcast %135 : vector<1x128xf32> to vector<16x128xf32>
      %137 = arith.addf %133, %136 : vector<16x128xf32>
      %cst_76 = arith.constant 0.000000e+00 : f32
      %138 = vector.broadcast %cst_76 : f32 to vector<16x128xf32>
      %139 = arith.maximumf %137, %138 : vector<16x128xf32>
      %140 = math.absf %137 : vector<16x128xf32>
      %cst_77 = arith.constant 0.000000e+00 : f32
      %141 = vector.broadcast %cst_77 : f32 to vector<16x128xf32>
      %142 = arith.subf %141, %140 : vector<16x128xf32>
      %143 = math.exp %142 : vector<16x128xf32>
      %cst_78 = arith.constant 1.000000e+00 : f32
      %144 = vector.broadcast %cst_78 : f32 to vector<16x128xf32>
      %145 = arith.addf %144, %143 : vector<16x128xf32>
      %146 = math.log %145 : vector<16x128xf32>
      %147 = arith.addf %139, %146 : vector<16x128xf32>
      %cst_79 = arith.constant 0.693147182 : f32
      %148 = vector.broadcast %cst_79 : f32 to vector<16x128xf32>
      %149 = arith.subf %147, %148 : vector<16x128xf32>
      %150 = arith.truncf %149 : vector<16x128xf32> to vector<16x128xbf16>
      %c1 = arith.constant 1 : index
      %c0_80 = arith.constant 0 : index
      %c0_81 = arith.constant 0 : index
      %151 = vector.load %arg15[%c1, %c0_80, %c0_81] : memref<2x128x128xbf16, #tpu.memory_space<vmem>>, vector<1x128x128xbf16>
      %152 = vector.shape_cast %151 : vector<1x128x128xbf16> to vector<128x128xbf16>
      %cst_82 = arith.constant dense<0.000000e+00> : vector<16x128xf32>
      %153 = tpu.matmul %150, %152, %cst_82 {dimension_numbers = #tpu.dot_dimension_numbers<[1], [0], [0], [1], [0, 0, 1, 1], [], []>} : vector<16x128xbf16>, vector<128x128xbf16>, vector<16x128xf32> -> vector<16x128xf32>
      %c1_83 = arith.constant 1 : index
      %c0_84 = arith.constant 0 : index
      %c0_85 = arith.constant 0 : index
      %154 = vector.load %arg16[%c1_83, %c0_84, %c0_85] : memref<2x1x128xf32, #tpu.memory_space<vmem>>, vector<1x1x128xf32>
      %155 = vector.shape_cast %154 : vector<1x1x128xf32> to vector<1x128xf32>
      %156 = vector.broadcast %155 : vector<1x128xf32> to vector<16x128xf32>
      %157 = arith.addf %153, %156 : vector<16x128xf32>
      %cst_86 = arith.constant 0.000000e+00 : f32
      %158 = vector.broadcast %cst_86 : f32 to vector<16x128xf32>
      %159 = arith.maximumf %157, %158 : vector<16x128xf32>
      %160 = math.absf %157 : vector<16x128xf32>
      %cst_87 = arith.constant 0.000000e+00 : f32
      %161 = vector.broadcast %cst_87 : f32 to vector<16x128xf32>
      %162 = arith.subf %161, %160 : vector<16x128xf32>
      %163 = math.exp %162 : vector<16x128xf32>
      %cst_88 = arith.constant 1.000000e+00 : f32
      %164 = vector.broadcast %cst_88 : f32 to vector<16x128xf32>
      %165 = arith.addf %164, %163 : vector<16x128xf32>
      %166 = math.log %165 : vector<16x128xf32>
      %167 = arith.addf %159, %166 : vector<16x128xf32>
      %cst_89 = arith.constant 0.693147182 : f32
      %168 = vector.broadcast %cst_89 : f32 to vector<16x128xf32>
      %169 = arith.subf %167, %168 : vector<16x128xf32>
      %170 = arith.truncf %169 : vector<16x128xf32> to vector<16x128xbf16>
      %c1_90 = arith.constant 1 : index
      %c0_91 = arith.constant 0 : index
      %c0_92 = arith.constant 0 : index
      %171 = vector.load %arg17[%c1_90, %c0_91, %c0_92] : memref<2x128x128xbf16, #tpu.memory_space<vmem>>, vector<1x128x128xbf16>
      %172 = vector.shape_cast %171 : vector<1x128x128xbf16> to vector<128x128xbf16>
      %cst_93 = arith.constant dense<0.000000e+00> : vector<16x128xf32>
      %173 = tpu.matmul %170, %172, %cst_93 {dimension_numbers = #tpu.dot_dimension_numbers<[1], [0], [0], [1], [0, 0, 1, 1], [], []>} : vector<16x128xbf16>, vector<128x128xbf16>, vector<16x128xf32> -> vector<16x128xf32>
      %174 = arith.addf %137, %173 : vector<16x128xf32>
      %c1_94 = arith.constant 1 : index
      %c0_95 = arith.constant 0 : index
      %c0_96 = arith.constant 0 : index
      %175 = vector.load %arg18[%c1_94, %c0_95, %c0_96] : memref<2x1x128xf32, #tpu.memory_space<vmem>>, vector<1x1x128xf32>
      %176 = vector.shape_cast %175 : vector<1x1x128xf32> to vector<1x128xf32>
      %177 = vector.broadcast %176 : vector<1x128xf32> to vector<16x128xf32>
      %178 = arith.addf %174, %177 : vector<16x128xf32>
      %c0_97 = arith.constant 0 : index
      %c0_98 = arith.constant 0 : index
      %179 = vector.load %arg19[%c0_97, %c0_98] : memref<16x128xf32, #tpu.memory_space<vmem>>, vector<16x128xf32>
      tpu.vector_store %arg19[%c0_97, %c0_98], %178 {strides = array<i32>} : memref<16x128xf32, #tpu.memory_space<vmem>>, vector<16x128xf32>,
    } else {
    }
    return
  }
  func.func @transform_0(%arg0: i32) -> (i32, i32) {
    %c0_i32 = arith.constant 0 : i32
    %c0_i32_0 = arith.constant 0 : i32
    %c0_i32_1 = arith.constant 0 : i32
    return %c0_i32, %c0_i32_0 : i32, i32
  }
  func.func @transform_1(%arg0: i32) -> (i32, i32) {
    %c0_i32 = arith.constant 0 : i32
    %c0_i32_0 = arith.constant 0 : i32
    return %arg0, %c0_i32 : i32, i32
  }
  func.func @transform_2(%arg0: i32) -> (i32, i32) {
    %c0_i32 = arith.constant 0 : i32
    %c0_i32_0 = arith.constant 0 : i32
    return %c0_i32, %arg0 : i32, i32
  }
  func.func @transform_3(%arg0: i32) -> (i32, i32) {
    %c0_i32 = arith.constant 0 : i32
    %c0_i32_0 = arith.constant 0 : i32
    return %arg0, %c0_i32 : i32, i32
  }
  func.func @transform_4(%arg0: i32) -> (i32, i32) {
    %c0_i32 = arith.constant 0 : i32
    %c0_i32_0 = arith.constant 0 : i32
    %c0_i32_1 = arith.constant 0 : i32
    return %c0_i32, %c0_i32_0 : i32, i32
  }
  func.func @transform_5(%arg0: i32) -> (i32, i32) {
    %c0_i32 = arith.constant 0 : i32
    %c0_i32_0 = arith.constant 0 : i32
    %c0_i32_1 = arith.constant 0 : i32
    return %c0_i32, %c0_i32_0 : i32, i32
  }
  func.func @transform_6(%arg0: i32) -> (i32, i32) {
    %c0_i32 = arith.constant 0 : i32
    %c0_i32_0 = arith.constant 0 : i32
    %c0_i32_1 = arith.constant 0 : i32
    return %c0_i32, %c0_i32_0 : i32, i32
  }
  func.func @transform_7(%arg0: i32) -> (i32, i32, i32) {
    %c0_i32 = arith.constant 0 : i32
    %c0_i32_0 = arith.constant 0 : i32
    %c0_i32_1 = arith.constant 0 : i32
    %c0_i32_2 = arith.constant 0 : i32
    return %c0_i32, %c0_i32_0, %c0_i32_1 : i32, i32, i32
  }
  func.func @transform_8(%arg0: i32) -> (i32, i32, i32) {
    %c0_i32 = arith.constant 0 : i32
    %c0_i32_0 = arith.constant 0 : i32
    %c0_i32_1 = arith.constant 0 : i32
    %c0_i32_2 = arith.constant 0 : i32
    return %c0_i32, %c0_i32_0, %c0_i32_1 : i32, i32, i32
  }
  func.func @transform_9(%arg0: i32) -> (i32, i32, i32) {
    %c0_i32 = arith.constant 0 : i32
    %c0_i32_0 = arith.constant 0 : i32
    %c0_i32_1 = arith.constant 0 : i32
    %c0_i32_2 = arith.constant 0 : i32
    return %c0_i32, %c0_i32_0, %c0_i32_1 : i32, i32, i32
  }
  func.func @transform_10(%arg0: i32) -> (i32, i32, i32) {
    %c0_i32 = arith.constant 0 : i32
    %c0_i32_0 = arith.constant 0 : i32
    %c0_i32_1 = arith.constant 0 : i32
    %c0_i32_2 = arith.constant 0 : i32
    return %c0_i32, %c0_i32_0, %c0_i32_1 : i32, i32, i32
  }
  func.func @transform_11(%arg0: i32) -> (i32, i32) {
    %c0_i32 = arith.constant 0 : i32
    %c0_i32_0 = arith.constant 0 : i32
    %c0_i32_1 = arith.constant 0 : i32
    return %c0_i32, %c0_i32_0 : i32, i32
  }
  func.func @transform_12(%arg0: i32) -> (i32, i32) {
    %c0_i32 = arith.constant 0 : i32
    %c0_i32_0 = arith.constant 0 : i32
    %c0_i32_1 = arith.constant 0 : i32
    return %c0_i32, %c0_i32_0 : i32, i32
  }
  func.func @transform_13(%arg0: i32) -> (i32, i32) {
    %c0_i32 = arith.constant 0 : i32
    %c0_i32_0 = arith.constant 0 : i32
    %c0_i32_1 = arith.constant 0 : i32
    return %c0_i32, %c0_i32_0 : i32, i32
  }
  func.func @transform_14(%arg0: i32) -> (i32, i32, i32) {
    %c0_i32 = arith.constant 0 : i32
    %c0_i32_0 = arith.constant 0 : i32
    %c0_i32_1 = arith.constant 0 : i32
    %c0_i32_2 = arith.constant 0 : i32
    return %c0_i32, %c0_i32_0, %c0_i32_1 : i32, i32, i32
  }
  func.func @transform_15(%arg0: i32) -> (i32, i32, i32) {
    %c0_i32 = arith.constant 0 : i32
    %c0_i32_0 = arith.constant 0 : i32
    %c0_i32_1 = arith.constant 0 : i32
    %c0_i32_2 = arith.constant 0 : i32
    return %c0_i32, %c0_i32_0, %c0_i32_1 : i32, i32, i32
  }
  func.func @transform_16(%arg0: i32) -> (i32, i32, i32) {
    %c0_i32 = arith.constant 0 : i32
    %c0_i32_0 = arith.constant 0 : i32
    %c0_i32_1 = arith.constant 0 : i32
    %c0_i32_2 = arith.constant 0 : i32
    return %c0_i32, %c0_i32_0, %c0_i32_1 : i32, i32, i32
  }
  func.func @transform_17(%arg0: i32) -> (i32, i32, i32) {
    %c0_i32 = arith.constant 0 : i32
    %c0_i32_0 = arith.constant 0 : i32
    %c0_i32_1 = arith.constant 0 : i32
    %c0_i32_2 = arith.constant 0 : i32
    return %c0_i32, %c0_i32_0, %c0_i32_1 : i32, i32, i32
  }
  func.func @transform_18(%arg0: i32) -> (i32, i32) {
    %c0_i32 = arith.constant 0 : i32
    %c0_i32_0 = arith.constant 0 : i32
    %c0_i32_1 = arith.constant 0 : i32
    return %c0_i32, %c0_i32_0 : i32, i32
  }
}

</mosaic_0001>

<bundles_post_ra>
// kernel: tpu_custom_call.1
= control target key start
LH: loop header
LB: loop body
LE: loop exit
PB: predicated region body
PF: predicated region fallthrough
CT: control target
= control target key end

     0   :  { %s3729_s0 = inlined_call_operand.vmem [shape: f32[16,128], index: 0, kind: input, shape index: {}]   ;;  %s3730_s1 = inlined_call_operand.vmem [shape: f32[384,64], index: 1, kind: input, shape index: {}]   ;;  %s3731_s2 = inlined_call_operand.vmem [shape: s32[1,384], index: 2, kind: input, shape index: {}]   ;;  %s3732_s3 = inlined_call_operand.vmem [shape: s32[384,1], index: 3, kind: input, shape index: {}]   ;;  %s3733_s4 = inlined_call_operand.vmem [shape: bf16[64,128], index: 4, kind: input, shape index: {}]   ;;  %s3734_s5 = inlined_call_operand.vmem [shape: bf16[128,256], index: 5, kind: input, shape index: {}]   ;;  %s3735_s6 = inlined_call_operand.vmem [shape: f32[1,256], index: 6, kind: input, shape index: {}]   ;;  %s3736_s7 = inlined_call_operand.vmem [shape: bf16[1,128,128], index: 7, kind: input, shape index: {}]   ;;  %s3737_s8 = inlined_call_operand.vmem [shape: f32[1,1,128], index: 8, kind: input, shape index: {}]   ;;  %s3738_s9 = inlined_call_operand.vmem [shape: bf16[1,128,128], index: 9, kind: input, shape index: {}]   ;;  %s3739_s10 = inlined_call_operand.vmem [shape: f32[1,1,128], index: 10, kind: input, shape index: {}]   ;;  %s3740_s11 = inlined_call_operand.vmem [shape: bf16[128,128], index: 11, kind: input, shape index: {}]   ;;  %s3741_s12 = inlined_call_operand.vmem [shape: f32[1,128], index: 12, kind: input, shape index: {}]   ;;  %s3742_s13 = inlined_call_operand.vmem [shape: f32[1,128], index: 13, kind: input, shape index: {}]   ;;  %s3743_s14 = inlined_call_operand.vmem [shape: bf16[2,128,128], index: 14, kind: input, shape index: {}]   ;;  %s3744_s15 = inlined_call_operand.vmem [shape: f32[2,1,128], index: 15, kind: input, shape index: {}]   ;;  %s3745_s16 = inlined_call_operand.vmem [shape: bf16[2,128,128], index: 16, kind: input, shape index: {}]   ;;  %s3746_s17 = inlined_call_operand.vmem [shape: f32[2,1,128], index: 17, kind: input, shape index: {}]   ;;  %s3747_s18 = inlined_call_operand.hbm [shape: f32[16,128], index: 18, kind: output, shape index: {}]  }
   0x1   :  { %3752 = sst [smem:[#allocation8_spill]] %s3729_s0 }
   0x2   :  { %3753 = sst [smem:[#allocation9_spill]] %s3730_s1 }
   0x3   :  { %3754 = sst [smem:[#allocation10_spill]] %s3731_s2 }
   0x4   :  { %3755 = sst [smem:[#allocation11_spill]] %s3746_s17 }
   0x5   :  { %3756 = sst [smem:[#allocation12_spill]] %s3747_s18 }
   0x6   :  { %23 = vsyncpa [#allocation5], 0  ;;  %s3212_s27 = smov 0  }
   0x7 LB: > { %3757 = sst [smem:[#allocation7_spill]] %s3105_s27  ;;  %s3218_s28 = sadd.s32 4294967295, %s3105_s27   ;;  %s3105_s27 = sphi %s3212_s27, %s29_s27  }
   0x8   : > { %p2389_p0 = scmp.ge.s32.totalorder %s3105_s27, 1  ;;  %p528_p1 = scmp.lt.s32.totalorder %s3105_s27, 4 }
   0xa   : > { %p529_p2 = pnand %p2389_p0, %p528_p1 }
   0xb   : > { %s2390_s29 = sshll.u32 (!%p529_p2), %s3218_s28, 4  ;;  %p591_p3 = scmp.lt.s32.totalorder (!%p529_p2), %s3218_s28, 2 }
   0xc   : > { %532 = sbr.rel (%p529_p2) target bundleno = 2649 (0xa59), region = 92  ;;  %p586_p4 = scmp.lt.s32.totalorder (!%p529_p2), %s2390_s29, 47 }
   0xd   : > { %s3758_s1 = sld [smem:[#allocation10_spill]] (!%p529_p2)  ;;  %p2394_p5 = scmp.ne.s32.totalorder (!%p529_p2), %s3218_s28, 0 }
   0xe   : > { %s3759_s23 = sld [smem:[#allocation9_spill]] (!%p529_p2) }
  0x11   : > { %s3225_s30 = scalar_select %p591_p3, %s3218_s28, 2 }
  0x12   : > { %s3767_s29 = smov (!%p586_p4, %s2390_s29), 47  ;;  %604 = sbr.rel (%p2394_p5) target bundleno = 319 (0x13f), region = 96 }
  0x13   : > { %s593_s20 = scalar_lea.vmem %s3758_s1, %s3225_s30  ;;  %s2391_s21 = sshll.u32 %s3767_s29, 3 }
  0x14   : > { %s3234_s24 = scalar_lea.vmem %s3759_s23, %s2391_s21  ;;  %s3239_s27 = scalar_lea.vmem %s3732_s3, %s2391_s21 }
  0x15   : > { %s3760_s29 = sld [smem:[#allocation8_spill]] (!%p2394_p5) }
  0x17   : > { %v2904_v0 = vld [vmem:[%s3734_s5 + $0x74] ss:$8 sps:$4 sm:$0xff]   ;;  %v2906_v1 = vld [vmem:[%s3734_s5 + $0x70] ss:$8 sps:$4 sm:$0xff]   ;;  %v3107_v2 = vmov 0   ;;  %v646_v40 = vlaneseq }
  0x18   : > { %768 = vmatprep.mubr.bf16.mxu0 %v3107_v2  ;;  %736 = vmatprep.subr.bf16.mxu0 %v2904_v0  ;;  %v2907_v3 = vld [vmem:[%s3734_s5 + $0x64] ss:$8 sps:$4 sm:$0xff]   ;;  %v2909_v4 = vld [vmem:[%s3734_s5 + $0x60] ss:$8 sps:$4 sm:$0xff]   ;;  %v2910_v5 = vld [vmem:[%s3734_s5 + $0x54] ss:$8 sps:$4 sm:$0xff]  }
  0x19   : > { %737 = vmatpush1.bf16.msra.mxu0 %v2906_v1  ;;  %v2912_v6 = vld [vmem:[%s3734_s5 + $0x50] ss:$8 sps:$4 sm:$0xff]   ;;  %v2913_v7 = vld [vmem:[%s3734_s5 + $0x44] ss:$8 sps:$4 sm:$0xff]   ;;  %v2915_v9 = vld [vmem:[%s3734_s5 + $0x40] ss:$8 sps:$4 sm:$0xff]  }
  0x1a   : > { %738 = vmatprep.subr.bf16.mxu0 %v2907_v3  ;;  %v2916_v12 = vld [vmem:[%s3734_s5 + $0x34] ss:$8 sps:$4 sm:$0xff]   ;;  %v2918_v16 = vld [vmem:[%s3734_s5 + $0x30] ss:$8 sps:$4 sm:$0xff]   ;;  %v2919_v18 = vld [vmem:[%s3734_s5 + $0x24] ss:$8 sps:$4 sm:$0xff]  }
  0x1b   : > { %v605_v8 = vld [vmem:[%s3760_s29] sm:$0xff]  ;;  %v606_v10 = vld [vmem:[%s3760_s29 + $0x8] sm:$0xff]  ;;  %v2922_v21 = vld [vmem:[%s3734_s5 + $0x14] ss:$8 sps:$4 sm:$0xff]   ;;  %v647_v41 = vshrl.u32 %v646_v40, 7 }
  0x1c   : > { %v609_v11 = vand.u32 2147483647, %v605_v8  ;;  %v610_v13 = vand.u32 2147483647, %v606_v10  ;;  %v2921_v20 = vld [vmem:[%s3734_s5 + $0x20] ss:$8 sps:$4 sm:$0xff]  }
  0x1d   : > { %739 = vmatpush1.bf16.msra.mxu0 %v2909_v4  ;;  %v2924_v22 = vld [vmem:[%s3734_s5 + $0x10] ss:$8 sps:$4 sm:$0xff]   ;;  %v2925_v23 = vld [vmem:[%s3734_s5 + $0x4] ss:$8 sps:$4 sm:$0xff]   ;;  %v2927_v24 = vld [vmem:[%s3734_s5] ss:$8 sps:$4 sm:$0xff]  }
  0x1e   : > { %740 = vmatprep.subr.bf16.mxu0 %v2910_v5  ;;  %v611_v14 = vsub.f32 0.0, %v609_v11  ;;  %v612_v15 = vsub.f32 0.0, %v610_v13  ;;  %v607_v29 = vmax.f32 %v605_v8, 0.0  ;;  %v608_v31 = vmax.f32 %v606_v10, 0.0  ;;  %v644_v43 = vld [vmem:[%s3735_s6] sm:$0x3] }
  0x1f   : > { %v648_v42 = vsub.s32 0, %v647_v41  ;;  %v652_v44 = vsub.s32 1, %v647_v41 }
  0x20   : > { %v613_v17 = vmul.f32 1.442695, %v611_v14  ;;  %v615_v19 = vmul.f32 1.442695, %v612_v15 }
  0x21   : > { %741 = vmatpush1.bf16.msra.mxu0 %v2912_v6  ;;  %v649_v45 = vrot.slane %v644_v43, %v648_v42  ;;  %v653_v46 = vrot.slane %v644_v43, %v652_v44 }
  0x22   : > { %742 = vmatprep.subr.bf16.mxu0 %v2913_v7  ;;  %2928 = vpow2.f32 %v613_v17 }
  0x23   : > { %2930 = vpow2.f32 %v615_v19 }
  0x25   : > { %743 = vmatpush1.bf16.msra.mxu0 %v2915_v9 }
  0x26   : > { %744 = vmatprep.subr.bf16.mxu0 %v2916_v12 }
  0x29   : > { %745 = vmatpush1.bf16.msra.mxu0 %v2918_v16 }
  0x2a   : > { %746 = vmatprep.subr.bf16.mxu0 %v2919_v18 }
  0x2d   : > { %747 = vmatpush1.bf16.msra.mxu0 %v2921_v20 }
  0x2e   : > { %748 = vmatprep.subr.bf16.mxu0 %v2922_v21 }
  0x2f   : > { %v2929_v25 = vpop.eup %2928 }
  0x30   : > { %v2931_v26 = vpop.eup %2930  ;;  %v617_v27 = vadd.f32 1.0, %v2929_v25 }
  0x31   : > { %749 = vmatpush1.bf16.msra.mxu0 %v2924_v22  ;;  %v618_v28 = vadd.f32 1.0, %v2931_v26 }
  0x32   : > { %750 = vmatprep.subr.bf16.mxu0 %v2925_v23  ;;  %2932 = vlog2.f32 %v617_v27 }
  0x33   : > { %2934 = vlog2.f32 %v618_v28 }
  0x35   : > { %751 = vmatpush1.bf16.msra.mxu0 %v2927_v24 }
  0x3f   : > { %v2933_v30 = vpop.eup %2932 }
  0x40   : > { %v2935_v32 = vpop.eup %2934  ;;  %v620_v33 = vmul.f32 0.6931472, %v2933_v30 }
  0x41   : > { %v622_v34 = vmul.f32 0.6931472, %v2935_v32 }
  0x42   : > { %v623_v35 = vadd.f32 %v620_v33, %v607_v29 }
  0x43   : > { %v624_v36 = vadd.f32 %v622_v34, %v608_v31 }
  0x44   : > { %v2395_v37 = vadd.f32 -0.6931472, %v623_v35 }
  0x45   : > { %v2396_v38 = vadd.f32 -0.6931472, %v624_v36 }
  0x47   : > { %v627_v39 = vpack.c.bf16 %v2396_v38, %v2395_v37 }
  0x49   : > { %769 = vmatmul.mubr.bf16.vlgmr.msra.gmra.mxu0 %v627_v39 }
 0x109   : > { %v770_v47 = vpop.f32.mrf.mxu0 }
 0x10a   : > { %v771_v48 = vadd.f32 %v770_v47, %v649_v45 }
 0x10b   : > { %v772_v49 = vpop.f32.mrf.mxu0 }
 0x10c   : > { %v783_v50 = vand.u32 2147483647, %v771_v48  ;;  %v773_v51 = vadd.f32 %v772_v49, %v653_v46  ;;  %v779_v12 = vmax.f32 %v771_v48, 0.0 }
 0x10d   : > { %v774_v52 = vpop.f32.mrf.mxu0 }
 0x10e   : > { %v787_v53 = vsub.f32 0.0, %v783_v50  ;;  %v784_v54 = vand.u32 2147483647, %v773_v51  ;;  %v775_v55 = vadd.f32 %v774_v52, %v649_v45  ;;  %v780_v21 = vmax.f32 %v773_v51, 0.0 }
 0x10f   : > { %v776_v56 = vpop.f32.mrf.mxu0 }
 0x110   : > { %v791_v57 = vmul.f32 1.442695, %v787_v53  ;;  %v788_v58 = vsub.f32 0.0, %v784_v54  ;;  %v785_v59 = vand.u32 2147483647, %v775_v55  ;;  %v777_v60 = vadd.f32 %v776_v56, %v653_v46 }
 0x111   : > { %v781_v19 = vmax.f32 %v775_v55, 0.0 }
 0x112   : > { %2936 = vpow2.f32 %v791_v57  ;;  %v793_v61 = vmul.f32 1.442695, %v788_v58  ;;  %v789_v62 = vsub.f32 0.0, %v785_v59  ;;  %v786_v63 = vand.u32 2147483647, %v777_v60 }
 0x113   : > { %v782_v25 = vmax.f32 %v777_v60, 0.0 }
 0x114   : > { %2938 = vpow2.f32 %v793_v61  ;;  %v795_v0 = vmul.f32 1.442695, %v789_v62  ;;  %v790_v1 = vsub.f32 0.0, %v786_v63 }
 0x116   : > { %2940 = vpow2.f32 %v795_v0  ;;  %v797_v2 = vmul.f32 1.442695, %v790_v1 }
 0x118   : > { %2942 = vpow2.f32 %v797_v2 }
 0x11f   : > { %v2937_v3 = vpop.eup %2936 }
 0x120   : > { %v799_v4 = vadd.f32 1.0, %v2937_v3 }
 0x121   : > { %v2939_v5 = vpop.eup %2938 }
 0x122   : > { %2944 = vlog2.f32 %v799_v4  ;;  %v800_v6 = vadd.f32 1.0, %v2939_v5 }
 0x123   : > { %v2941_v7 = vpop.eup %2940 }
 0x124   : > { %2946 = vlog2.f32 %v800_v6  ;;  %v801_v8 = vadd.f32 1.0, %v2941_v7 }
 0x125   : > { %v2943_v9 = vpop.eup %2942 }
 0x126   : > { %2948 = vlog2.f32 %v801_v8  ;;  %v802_v10 = vadd.f32 1.0, %v2943_v9 }
 0x128   : > { %2950 = vlog2.f32 %v802_v10 }
 0x12f   : > { %v2945_v11 = vpop.eup %2944 }
 0x130   : > { %v804_v13 = vmul.f32 0.6931472, %v2945_v11 }
 0x131   : > { %v2947_v14 = vpop.eup %2946 }
 0x132   : > { %v811_v15 = vadd.f32 %v804_v13, %v779_v12  ;;  %v806_v17 = vmul.f32 0.6931472, %v2947_v14 }
 0x133   : > { %v2949_v16 = vpop.eup %2948 }
 0x134   : > { %v2413_v18 = vadd.f32 -0.6931472, %v811_v15  ;;  %v808_v20 = vmul.f32 0.6931472, %v2949_v16  ;;  %v812_v24 = vadd.f32 %v806_v17, %v780_v21 }
 0x135   : > { %v2951_v22 = vpop.eup %2950 }
 0x136   : > { %819 = vst [vmem:[#allocation2] sm:$0xff] %v2413_v18  ;;  %v813_v23 = vadd.f32 %v808_v20, %v781_v19  ;;  %v810_v26 = vmul.f32 0.6931472, %v2951_v22  ;;  %v2414_v29 = vadd.f32 -0.6931472, %v812_v24 }
 0x138   : > { %v2415_v27 = vadd.f32 -0.6931472, %v813_v23  ;;  %v814_v28 = vadd.f32 %v810_v26, %v782_v25 }
 0x13a   : > { %820 = vst [vmem:[#allocation2 + $0x8] sm:$0xff] %v2415_v27  ;;  %v2416_v30 = vadd.f32 -0.6931472, %v814_v28 }
 0x13c   : > { %v2583_v31 = vpack.c.bf16 %v2416_v30, %v2414_v29 }
 0x13e   : > { %2584 = vst [vmem:[#allocation3] sm:$0xff] %v2583_v31  }
 0x13f PF: > { %v1013_v32 = vld [vmem:[%s3239_s27 + $0x10] sm:$0xff]  ;;  %v1011_v33 = vld [vmem:[%s3239_s27] sm:$0xff]  ;;  %v3108_v34 = vmov 0   ;;  %v1014_v35 = vld [vmem:[%s3239_s27 + $0x18] sm:$0xff]  ;;  %vm887_vm0 = vcmask 523264   ;;  %v3109_v51 = vmov 0.0   ;;  %v1009_v15 = vlaneseq }
 0x140   : > { %2953 = vset.pattern.permute.xlu1 %v3108_v34  ;;  %2952 = vset.pattern.permute.xlu0 %v3108_v34  ;;  %v1012_v36 = vld [vmem:[%s3239_s27 + $0x8] sm:$0xff]  ;;  %v1015_v38 = vld [vmem:[%s3239_s27 + $0x20] sm:$0xff]  ;;  %v2954_v39 = vld [vmem:[%s3733_s4 + $0x18] sm:$0xff]   ;;  %vm1139_vm5 = vcmask 130048   ;;  %p2461_p6 = scmp.ne.s32.totalorder %s3218_s28, 2 }
 0x141   : > { %1034 = vperm.xlu1 %2953, %v1013_v32   ;;  %1028 = vperm.xlu0 %2952, %v1011_v33   ;;  %v1016_v37 = vld [vmem:[%s3239_s27 + $0x28] sm:$0xff]  ;;  %v2955_v40 = vld [vmem:[%s3733_s4 + $0x10] sm:$0xff]   ;;  %v831_v41 = vld [vmem:[%s3234_s24] sm:$0xff]  ;;  %v3353_v16 = vand.u32 127, %v1009_v15  ;;  %s3762_s21 = sld [smem:[#allocation8_spill]] (!%p2461_p6) }
 0x142   : > { %2678 = vmatprep.subr.bf16.mxu0 %v2954_v39  ;;  %v832_v42 = vld [vmem:[%s3234_s24 + $0x8] sm:$0xff]  ;;  %v1018_v43 = vld [vmem:[%s3239_s27 + $0x38] sm:$0xff]  ;;  %v1017_v44 = vld [vmem:[%s3239_s27 + $0x30] sm:$0xff] }
 0x143   : > { %2679 = vmatpush3.bf16.msra.mxu0 %v2954_v39  ;;  %v847_v45 = vpack.c.bf16 %v832_v42, %v831_v41  ;;  %v2956_v46 = vld [vmem:[%s3733_s4 + $0x8] sm:$0xff]   ;;  %v1019_v49 = vld [vmem:[%s3239_s27 + $0x40] sm:$0xff]  ;;  %v833_v52 = vld [vmem:[%s3234_s24 + $0x10] sm:$0xff] }
 0x144   : > { %2680 = vmatprep.subr.bf16.mxu0 %v2955_v40  ;;  %v1020_v48 = vld [vmem:[%s3239_s27 + $0x48] sm:$0xff]  ;;  %v2957_v50 = vld [vmem:[%s3733_s4] sm:$0xff]   ;;  %v834_v53 = vld [vmem:[%s3234_s24 + $0x18] sm:$0xff] }
 0x145   : > { %1037 = vperm.xlu1 %2953, %v1014_v35   ;;  %1031 = vperm.xlu0 %2952, %v1012_v36   ;;  %v2958_v47 = vld [vmem:[#allocation3] sm:$0xff]   ;;  %v835_v54 = vld [vmem:[%s3234_s24 + $0x20] sm:$0xff]  ;;  %v836_v55 = vld [vmem:[%s3234_s24 + $0x28] sm:$0xff]  ;;  %v848_v58 = vpack.c.bf16 %v834_v53, %v833_v52 }
 0x146   : > { %2686 = vmatprep.mubr.msk.bf16.mxu0 %vm887_vm0, %v847_v45  ;;  %2702 = vmatprep.subr.bf16.mxu1 %v2958_v47  ;;  %v1022_v56 = vld [vmem:[%s3239_s27 + $0x58] sm:$0xff]  ;;  %v1021_v57 = vld [vmem:[%s3239_s27 + $0x50] sm:$0xff]  ;;  %v849_v59 = vpack.c.bf16 %v836_v55, %v835_v54  ;;  %v1024_v60 = vld [vmem:[%s3239_s27 + $0x68] sm:$0xff] }
 0x147   : > { %2681 = vmatpush3.bf16.msra.mxu0 %v2955_v40  ;;  %2703 = vmatpush3.bf16.msra.mxu1 %v2958_v47  ;;  %v1023_v61 = vld [vmem:[%s3239_s27 + $0x60] sm:$0xff]  ;;  %v837_v62 = vld [vmem:[%s3234_s24 + $0x30] sm:$0xff]  ;;  %v838_v63 = vld [vmem:[%s3234_s24 + $0x38] sm:$0xff] }
 0x148   : > { %2682 = vmatprep.subr.bf16.mxu0 %v2956_v46  ;;  %2720 = vmatprep.subr.bf16.mxu1 %v3109_v51  ;;  %v839_v0 = vld [vmem:[%s3234_s24 + $0x40] sm:$0xff]  ;;  %v840_v1 = vld [vmem:[%s3234_s24 + $0x48] sm:$0xff]  ;;  %v1026_v2 = vld [vmem:[%s3239_s27 + $0x78] sm:$0xff]  ;;  %v850_v4 = vpack.c.bf16 %v838_v63, %v837_v62 }
 0x149   : > { %1043 = vperm.xlu1 %2953, %v1016_v37   ;;  %1040 = vperm.xlu0 %2952, %v1015_v38   ;;  %v1025_v3 = vld [vmem:[%s3239_s27 + $0x70] sm:$0xff]  ;;  %v851_v5 = vpack.c.bf16 %v840_v1, %v839_v0  ;;  %v842_v7 = vld [vmem:[%s3234_s24 + $0x58] sm:$0xff]  ;;  %v843_v8 = vld [vmem:[%s3234_s24 + $0x60] sm:$0xff] }
 0x14a   : > { %v841_v6 = vld [vmem:[%s3234_s24 + $0x50] sm:$0xff]  ;;  %v844_v9 = vld [vmem:[%s3234_s24 + $0x68] sm:$0xff]  ;;  %v846_v13 = vld [vmem:[%s3234_s24 + $0x78] sm:$0xff] }
 0x14b   : > { %2683 = vmatpush3.bf16.msra.mxu0 %v2956_v46  ;;  %v852_v10 = vpack.c.bf16 %v842_v7, %v841_v6  ;;  %v853_v11 = vpack.c.bf16 %v844_v9, %v843_v8  ;;  %v845_v12 = vld [vmem:[%s3234_s24 + $0x70] sm:$0xff] }
 0x14c   : > { %2684 = vmatprep.subr.bf16.mxu0 %v2957_v50  ;;  %v854_v14 = vpack.c.bf16 %v846_v13, %v845_v12 }
 0x14d   : > { %1049 = vperm.xlu1 %2953, %v1018_v43   ;;  %1046 = vperm.xlu0 %2952, %v1017_v44  }
 0x14f   : > { %2685 = vmatpush3.bf16.msra.mxu0 %v2957_v50 }
 0x151   : > { %1055 = vperm.xlu1 %2953, %v1020_v48   ;;  %1052 = vperm.xlu0 %2952, %v1019_v49  }
 0x152   : > { %2687 = vmatmul.mubr.msk.bf16.vlgmr.msra.gmra.mxu0 %vm887_vm0, %v848_v58 }
 0x153   : > { %2690 = vmatprep.mubr.msk.bf16.mxu0 %vm887_vm0, %v849_v59 }
 0x155   : > { %1061 = vperm.xlu1 %2953, %v1022_v56   ;;  %1058 = vperm.xlu0 %2952, %v1021_v57  }
 0x159   : > { %1067 = vperm.xlu1 %2953, %v1024_v60   ;;  %1064 = vperm.xlu0 %2952, %v1023_v61  }
 0x15a   : > { %2691 = vmatmul.mubr.msk.bf16.gmra.mxu0 %vm887_vm0, %v850_v4 }
 0x15b   : > { %2694 = vmatprep.mubr.msk.bf16.mxu0 %vm887_vm0, %v851_v5 }
 0x15d   : > { %1073 = vperm.xlu1 %2953, %v1026_v2   ;;  %1070 = vperm.xlu0 %2952, %v1025_v3  }
 0x162   : > { %2695 = vmatmul.mubr.msk.bf16.gmra.mxu0 %vm887_vm0, %v852_v10 }
 0x163   : > { %2698 = vmatprep.mubr.msk.bf16.mxu0 %vm887_vm0, %v853_v11 }
 0x16a   : > { %2699 = vmatmul.mubr.msk.bf16.gmra.mxu0 %vm887_vm0, %v854_v14 }
 0x1bc   : > { %v1035_v17 = vpop.permute.xlu1 %1034  ;;  %v1029_v18 = vpop.permute.xlu0 %1028 }
 0x1bd   : > { %vm1077_vm1 = vcmp.eq.s32.totalorder %v3353_v16, %v1035_v17  ;;  %vm1075_vm2 = vcmp.eq.s32.totalorder %v3353_v16, %v1029_v18 }
 0x1be   : > { %v2433_v21 = vsel %vm1077_vm1, 1.0, %v3109_v51  ;;  %v2431_v22 = vsel %vm1075_vm2, 1.0, %v3109_v51  ;;  %vm3110_vm2 = vmmov 0  }
 0x1c0   : > { %v1038_v19 = vpop.permute.xlu1 %1037  ;;  %v1032_v20 = vpop.permute.xlu0 %1031 }
 0x1c1   : > { %vm1078_vm3 = vcmp.eq.s32.totalorder %v3353_v16, %v1038_v19  ;;  %vm1076_vm4 = vcmp.eq.s32.totalorder %v3353_v16, %v1032_v20 }
 0x1c2   : > { %v2434_v23 = vsel %vm1078_vm3, 1.0, %v3109_v51  ;;  %v2432_v24 = vsel %vm1076_vm4, 1.0, %v3109_v51 }
 0x1c3   : > { %v1124_v25 = vpack.c.bf16 %v2434_v23, %v2433_v21  ;;  %v1123_v26 = vpack.c.bf16 %v2432_v24, %v2431_v22 }
 0x1c4   : > { %v1044_v27 = vpop.permute.xlu1 %1043  ;;  %v1041_v28 = vpop.permute.xlu0 %1040 }
 0x1c5   : > { %vm1080_vm6 = vcmp.eq.s32.totalorder %v3353_v16, %v1044_v27  ;;  %vm1079_vm7 = vcmp.eq.s32.totalorder %v3353_v16, %v1041_v28  ;;  %2704 = vmatprep.mubr.msk.bf16.mxu1 %vm1139_vm5, %v1123_v26 }
 0x1c6   : > { %v2436_v29 = vsel %vm1080_vm6, 1.0, %v3109_v51  ;;  %v2435_v30 = vsel %vm1079_vm7, 1.0, %v3109_v51  ;;  %2705 = vmatmul.mubr.msk.bf16.vlgmr.msra.gmra.mxu1 %vm1139_vm5, %v1124_v25 }
 0x1c7   : > { %v1125_v31 = vpack.c.bf16 %v2436_v29, %v2435_v30 }
 0x1c8   : > { %v1050_v32 = vpop.permute.xlu1 %1049  ;;  %v1047_v33 = vpop.permute.xlu0 %1046 }
 0x1c9   : > { %vm1082_vm8 = vcmp.eq.s32.totalorder %v3353_v16, %v1050_v32  ;;  %vm1081_vm9 = vcmp.eq.s32.totalorder %v3353_v16, %v1047_v33  ;;  %2708 = vmatprep.mubr.msk.bf16.mxu1 %vm1139_vm5, %v1125_v31 }
 0x1ca   : > { %v2438_v34 = vsel %vm1082_vm8, 1.0, %v3109_v51  ;;  %v2437_v35 = vsel %vm1081_vm9, 1.0, %v3109_v51 }
 0x1cb   : > { %v1126_v36 = vpack.c.bf16 %v2438_v34, %v2437_v35 }
 0x1cc   : > { %v1056_v37 = vpop.permute.xlu1 %1055  ;;  %v1053_v38 = vpop.permute.xlu0 %1052 }
 0x1cd   : > { %vm1084_vm10 = vcmp.eq.s32.totalorder %v3353_v16, %v1056_v37  ;;  %vm1083_vm11 = vcmp.eq.s32.totalorder %v3353_v16, %v1053_v38 }
 0x1ce   : > { %v2440_v39 = vsel %vm1084_vm10, 1.0, %v3109_v51  ;;  %v2439_v40 = vsel %vm1083_vm11, 1.0, %v3109_v51  ;;  %2709 = vmatmul.mubr.msk.bf16.gmra.mxu1 %vm1139_vm5, %v1126_v36 }
 0x1cf   : > { %v1127_v41 = vpack.c.bf16 %v2440_v39, %v2439_v40 }
 0x1d0   : > { %v1062_v42 = vpop.permute.xlu1 %1061  ;;  %v1059_v43 = vpop.permute.xlu0 %1058 }
 0x1d1   : > { %vm1086_vm12 = vcmp.eq.s32.totalorder %v3353_v16, %v1062_v42  ;;  %vm1085_vm13 = vcmp.eq.s32.totalorder %v3353_v16, %v1059_v43  ;;  %2712 = vmatprep.mubr.msk.bf16.mxu1 %vm1139_vm5, %v1127_v41 }
 0x1d2   : > { %v2442_v44 = vsel %vm1086_vm12, 1.0, %v3109_v51  ;;  %v2441_v45 = vsel %vm1085_vm13, 1.0, %v3109_v51 }
 0x1d3   : > { %v1128_v46 = vpack.c.bf16 %v2442_v44, %v2441_v45  ;;  %v1286_v44 = vshrl.u32 %v1009_v15, 7 }
 0x1d4   : > { %v1068_v47 = vpop.permute.xlu1 %1067  ;;  %v1065_v48 = vpop.permute.xlu0 %1064 }
 0x1d5   : > { %vm1088_vm14 = vcmp.eq.s32.totalorder %v3353_v16, %v1068_v47  ;;  %vm1087_vm15 = vcmp.eq.s32.totalorder %v3353_v16, %v1065_v48  ;;  %v1287_v48 = vadd.s32 8, %v1286_v44 }
 0x1d6   : > { %v2444_v49 = vsel %vm1088_vm14, 1.0, %v3109_v51  ;;  %v2443_v50 = vsel %vm1087_vm15, 1.0, %v3109_v51  ;;  %2713 = vmatmul.mubr.msk.bf16.gmra.mxu1 %vm1139_vm5, %v1128_v46 }
 0x1d7   : > { %v1129_v52 = vpack.c.bf16 %v2444_v49, %v2443_v50 }
 0x1d8   : > { %v1074_v53 = vpop.permute.xlu1 %1073  ;;  %v1071_v54 = vpop.permute.xlu0 %1070 }
 0x1d9   : > { %vm1090_vm0 = vcmp.eq.s32.totalorder %v3353_v16, %v1074_v53  ;;  %vm1089_vm1 = vcmp.eq.s32.totalorder %v3353_v16, %v1071_v54  ;;  %2716 = vmatprep.mubr.msk.bf16.mxu1 %vm1139_vm5, %v1129_v52  ;;  %v2456_v52 = vld [vmem:[%s593_s20] ss:$0 sm:$0xff]  ;;  %v3111_v54 = vmov 1.0|1.0   ;;  %s3763_s20 = sld [smem:[#allocation11_spill]] (!%p2461_p6) }
 0x1da   : > { %v2446_v55 = vsel %vm1090_vm0, 1.0, %v3109_v51  ;;  %v2445_v56 = vsel %vm1089_vm1, 1.0, %v3109_v51  ;;  %vm1293_vm3 = vcmp.eq.s32.totalorder %v1286_v44, %v2456_v52  ;;  %vm1294_vm4 = vcmp.eq.s32.totalorder %v1287_v48, %v2456_v52 }
 0x1db   : > { %v1130_v57 = vpack.c.bf16 %v2446_v55, %v2445_v56  ;;  %v1300_v55 = vld [vmem:[#allocation2] sm:$0xff] }
 0x1de   : > { %2717 = vmatmul.mubr.msk.bf16.gmra.mxu1 %vm1139_vm5, %v1130_v57  ;;  %vm2459_vm5 = vmpackc.low %vm1294_vm4, %vm1293_vm3 }
 0x1df   : > { %2736 = vmatprep.mubr.msk.bf16.mxu1 %vm3110_vm2, %v3109_v51 }
 0x212   : > { %v2688_v58 = vpop.f32.mrf.mxu0 }
 0x214   : > { %v3396_v59 = vpop.f32.mrf.mxu0 }
 0x216   : > { %v2689_v60 = vpop.f32.mrf.mxu0 }
 0x218   : > { %v3398_v61 = vpop.f32.mrf.mxu0 }
 0x21a   : > { %v2692_v62 = vpop.f32.mrf.mxu0 }
 0x21c   : > { %v962_v63 = vpop.f32.mrf.mxu0 }
 0x21e   : > { %v2693_v0 = vpop.f32.mrf.mxu0 }
 0x220   : > { %v965_v1 = vpop.f32.mrf.mxu0 }
 0x222   : > { %v2696_v4 = vpop.f32.mrf.mxu0 }
 0x224   : > { %v978_v7 = vpop.f32.mrf.mxu0 }
 0x226   : > { %v2697_v10 = vpop.f32.mrf.mxu0 }
 0x228   : > { %v981_v13 = vpop.f32.mrf.mxu0 }
 0x22a   : > { %v2700_v16 = vpop.f32.mrf.mxu0 }
 0x22c   : > { %v994_v19 = vpop.f32.mrf.mxu0 }
 0x22e   : > { %v2701_v22 = vpop.f32.mrf.mxu0 }
 0x230   : > { %v997_v27 = vpop.f32.mrf.mxu0 }
 0x286   : > { %v2706_v2 = vpop.f32.mrf.mxu1 }
 0x287   : > { %v1263_v47 = vmul.f32 %v2706_v2, %v2688_v58 }
 0x288   : > { %v1198_v3 = vpop.f32.mrf.mxu1 }
 0x289   : > { %v1261_v53 = vmul.f32 %v1198_v3, %v3396_v59 }
 0x28a   : > { %v2707_v5 = vpop.f32.mrf.mxu1 }
 0x28b   : > { %v1264_v45 = vmul.f32 %v2707_v5, %v2689_v60  ;;  %v1301_v60 = vld [vmem:[#allocation2 + $0x8] sm:$0xff] }
 0x28c   : > { %v1201_v6 = vpop.f32.mrf.mxu1 }
 0x28d   : > { %v1278_v49 = vpack.c.bf16 %v1264_v45, %v1263_v47  ;;  %v1262_v50 = vmul.f32 %v1201_v6, %v3398_v61 }
 0x28e   : > { %v2710_v8 = vpop.f32.mrf.mxu1 }
 0x28f   : > { %v1267_v40 = vmul.f32 %v2710_v8, %v2692_v62  ;;  %v1277_v15 = vpack.c.bf16 %v1262_v50, %v1261_v53 }
 0x290   : > { %v1214_v9 = vpop.f32.mrf.mxu1 }
 0x291   : > { %v1265_v43 = vmul.f32 %v1214_v9, %v962_v63 }
 0x292   : > { %v2711_v11 = vpop.f32.mrf.mxu1 }
 0x293   : > { %v1268_v38 = vmul.f32 %v2711_v11, %v2693_v0 }
 0x294   : > { %v1217_v12 = vpop.f32.mrf.mxu1 }
 0x295   : > { %v1280_v41 = vpack.c.bf16 %v1268_v38, %v1267_v40  ;;  %v1266_v42 = vmul.f32 %v1217_v12, %v965_v1 }
 0x296   : > { %v2714_v14 = vpop.f32.mrf.mxu1 }
 0x297   : > { %v1271_v34 = vmul.f32 %v2714_v14, %v2696_v4  ;;  %v1279_v46 = vpack.c.bf16 %v1266_v42, %v1265_v43 }
 0x298   : > { %v1230_v17 = vpop.f32.mrf.mxu1 }
 0x299   : > { %v1269_v37 = vmul.f32 %v1230_v17, %v978_v7 }
 0x29a   : > { %v2715_v18 = vpop.f32.mrf.mxu1 }
 0x29b   : > { %v1272_v32 = vmul.f32 %v2715_v18, %v2697_v10 }
 0x29c   : > { %v1233_v20 = vpop.f32.mrf.mxu1 }
 0x29d   : > { %v1282_v35 = vpack.c.bf16 %v1272_v32, %v1271_v34  ;;  %v1270_v36 = vmul.f32 %v1233_v20, %v981_v13 }
 0x29e   : > { %v2718_v21 = vpop.f32.mrf.mxu1 }
 0x29f   : > { %v1275_v25 = vmul.f32 %v2718_v21, %v2700_v16  ;;  %v1281_v39 = vpack.c.bf16 %v1270_v36, %v1269_v37 }
 0x2a0   : > { %v1246_v23 = vpop.f32.mrf.mxu1 }
 0x2a1   : > { %v1273_v31 = vmul.f32 %v1246_v23, %v994_v19 }
 0x2a2   : > { %v2719_v24 = vpop.f32.mrf.mxu1 }
 0x2a3   : > { %v1276_v26 = vmul.f32 %v2719_v24, %v2701_v22 }
 0x2a4   : > { %v1249_v28 = vpop.f32.mrf.mxu1 }
 0x2a5   : > { %v1284_v29 = vpack.c.bf16 %v1276_v26, %v1275_v25  ;;  %v1274_v30 = vmul.f32 %v1249_v28, %v997_v27 }
 0x2a7   : > { %2721 = vmatpush3.bf16.msra.mxu1 %v1284_v29  ;;  %v1283_v33 = vpack.c.bf16 %v1274_v30, %v1273_v31 }
 0x2a8   : > { %2722 = vmatprep.subr.bf16.mxu1 %v3109_v51 }
 0x2ab   : > { %2723 = vmatpush3.bf16.msra.mxu1 %v1283_v33 }
 0x2ac   : > { %2724 = vmatprep.subr.bf16.mxu1 %v3109_v51 }
 0x2af   : > { %2725 = vmatpush3.bf16.msra.mxu1 %v1282_v35 }
 0x2b0   : > { %2726 = vmatprep.subr.bf16.mxu1 %v3109_v51 }
 0x2b3   : > { %2727 = vmatpush3.bf16.msra.mxu1 %v1281_v39 }
 0x2b4   : > { %2728 = vmatprep.subr.bf16.mxu1 %v3109_v51 }
 0x2b7   : > { %2729 = vmatpush3.bf16.msra.mxu1 %v1280_v41 }
 0x2b8   : > { %2730 = vmatprep.subr.bf16.mxu1 %v3109_v51 }
 0x2bb   : > { %2731 = vmatpush3.bf16.msra.mxu1 %v1279_v46 }
 0x2bc   : > { %2732 = vmatprep.subr.bf16.mxu1 %v3109_v51 }
 0x2bf   : > { %2733 = vmatpush3.bf16.msra.mxu1 %v1278_v49 }
 0x2c0   : > { %2734 = vmatprep.subr.bf16.mxu1 %v3109_v51 }
 0x2c3   : > { %2735 = vmatpush3.bf16.msra.mxu1 %v1277_v15 }
 0x2c6   : > { %2737 = vmatmul.mubr.msk.bf16.vlgmr.msra.gmra.mxu1 %vm2459_vm5, %v3111_v54 }
 0x386   : > { %v1336_v56 = vpop.f32.mrf.mxu1 }
 0x387   : > { %v1343_v57 = vadd.f32 %v1336_v56, %v1300_v55 }
 0x388   : > { %v2738_v58 = vpop.f32.mrf.mxu1 }
 0x389   : > { %1345 = vst [vmem:[#allocation2] sm:$0xff] %v1343_v57  ;;  %1350 = sbr.rel (%p2461_p6) target bundleno = 2627 (0xa43), region = 100 }
 0x38a   : > { %v1339_v61 = vpop.f32.mrf.mxu1 }
 0x38b   : > { %v1344_v62 = vadd.f32 %v1339_v61, %v1301_v60 }
 0x38c   : > { %v2739_v63 = vpop.f32.mrf.mxu1 }
 0x38d   : > { %1346 = vst [vmem:[#allocation2 + $0x8] sm:$0xff] %v1344_v62 }
 0x38e   : > { %v2959_v51 = vld [vmem:[%s3736_s7 + $0x38] sm:$0xff]   ;;  %v3112_v59 = vmov 0.0   ;;  %v2960_v0 = vld [vmem:[%s3736_s7 + $0x30] sm:$0xff]   ;;  %vm3113_vm6 = vmmov 0   ;;  %v2961_v1 = vld [vmem:[%s3736_s7 + $0x28] sm:$0xff]  }
 0x38f   : > { %2740 = vmatprep.subr.bf16.mxu0 %v3112_v59  ;;  %2760 = vmatprep.subr.bf16.mxu1 %v3112_v59  ;;  %v2962_v4 = vld [vmem:[%s3736_s7 + $0x20] sm:$0xff]   ;;  %v2963_v9 = vld [vmem:[%s3736_s7 + $0x18] sm:$0xff]   ;;  %v2964_v12 = vld [vmem:[%s3736_s7 + $0x10] sm:$0xff]  }
 0x390   : > { %2741 = vmatpush3.bf16.msra.mxu0 %v2959_v51  ;;  %2756 = vmatprep.mubr.msk.bf16.mxu0 %vm3113_vm6, %v3112_v59  ;;  %v3433_v2 = vld [vmem:[#allocation2] sm:$0xff]  ;;  %v2965_v13 = vld [vmem:[%s3736_s7 + $0x8] sm:$0xff]   ;;  %v2967_v31 = vld [vmem:[%s3738_s9 + $0x38] sm:$0xff]  }
 0x391   : > { %2742 = vmatprep.subr.bf16.mxu0 %v3112_v59  ;;  %2776 = vmatprep.mubr.msk.bf16.mxu1 %vm3113_vm6, %v3112_v59  ;;  %v1355_v5 = vand.u32 2147483647, %v3433_v2  ;;  %v2966_v14 = vld [vmem:[%s3736_s7] sm:$0xff]   ;;  %v1353_v20 = vmax.f32 %v3433_v2, 0.0  ;;  %v2968_v32 = vld [vmem:[%s3738_s9 + $0x30] sm:$0xff]   ;;  %v2969_v33 = vld [vmem:[%s3738_s9 + $0x28] sm:$0xff]  }
 0x392   : > { %2761 = vmatpush3.bf16.msra.mxu1 %v2967_v31  ;;  %v2970_v34 = vld [vmem:[%s3738_s9 + $0x20] sm:$0xff]   ;;  %v2971_v35 = vld [vmem:[%s3738_s9 + $0x18] sm:$0xff]   ;;  %v2972_v36 = vld [vmem:[%s3738_s9 + $0x10] sm:$0xff]  }
 0x393   : > { %v1357_v7 = vsub.f32 0.0, %v1355_v5  ;;  %2762 = vmatprep.subr.bf16.mxu1 %v3112_v59  ;;  %v2973_v37 = vld [vmem:[%s3738_s9 + $0x8] sm:$0xff]   ;;  %v2974_v38 = vld [vmem:[%s3738_s9] sm:$0xff]   ;;  %v2975_v5 = vld [vmem:[%s3740_s11 + $0x38] sm:$0xff]  }
 0x394   : > { %2743 = vmatpush3.bf16.msra.mxu0 %v2960_v0  ;;  %v3435_v3 = vld [vmem:[#allocation2 + $0x8] sm:$0xff]  ;;  %v2464_v39 = vld [vmem:[%s3737_s8] ss:$0 sm:$0xff] }
 0x395   : > { %2744 = vmatprep.subr.bf16.mxu0 %v3112_v59  ;;  %v1356_v6 = vand.u32 2147483647, %v3435_v3  ;;  %v1359_v10 = vmul.f32 1.442695, %v1357_v7  ;;  %v1354_v22 = vmax.f32 %v3435_v3, 0.0  ;;  %v2977_v7 = vld [vmem:[%s3740_s11 + $0x28] sm:$0xff]  }
 0x396   : > { %2763 = vmatpush3.bf16.msra.mxu1 %v2968_v32 }
 0x397   : > { %v1358_v8 = vsub.f32 0.0, %v1356_v6  ;;  %3015 = vpow2.f32 %v1359_v10  ;;  %2764 = vmatprep.subr.bf16.mxu1 %v3112_v59  ;;  %v2976_v6 = vld [vmem:[%s3740_s11 + $0x30] sm:$0xff]  }
 0x398   : > { %2745 = vmatpush3.bf16.msra.mxu0 %v2961_v1  ;;  %v2980_v10 = vld [vmem:[%s3740_s11 + $0x10] sm:$0xff]  }
 0x399   : > { %2746 = vmatprep.subr.bf16.mxu0 %v3112_v59  ;;  %v1361_v11 = vmul.f32 1.442695, %v1358_v8  ;;  %v2978_v8 = vld [vmem:[%s3740_s11 + $0x20] sm:$0xff]  }
 0x39a   : > { %2765 = vmatpush3.bf16.msra.mxu1 %v2969_v33 }
 0x39b   : > { %3017 = vpow2.f32 %v1361_v11  ;;  %2766 = vmatprep.subr.bf16.mxu1 %v3112_v59  ;;  %v2981_v11 = vld [vmem:[%s3740_s11 + $0x8] sm:$0xff]  }
 0x39c   : > { %2747 = vmatpush3.bf16.msra.mxu0 %v2962_v4 }
 0x39d   : > { %2748 = vmatprep.subr.bf16.mxu0 %v3112_v59 }
 0x39e   : > { %2767 = vmatpush3.bf16.msra.mxu1 %v2970_v34 }
 0x39f   : > { %2768 = vmatprep.subr.bf16.mxu1 %v3112_v59 }
 0x3a0   : > { %2749 = vmatpush3.bf16.msra.mxu0 %v2963_v9  ;;  %v2979_v9 = vld [vmem:[%s3740_s11 + $0x18] sm:$0xff]  }
 0x3a1   : > { %2750 = vmatprep.subr.bf16.mxu0 %v3112_v59 }
 0x3a2   : > { %2769 = vmatpush3.bf16.msra.mxu1 %v2971_v35 }
 0x3a3   : > { %2770 = vmatprep.subr.bf16.mxu1 %v3112_v59 }
 0x3a4   : > { %2751 = vmatpush3.bf16.msra.mxu0 %v2964_v12  ;;  %v3016_v16 = vpop.eup %3015  ;;  %v2982_v12 = vld [vmem:[%s3740_s11] sm:$0xff]  }
 0x3a5   : > { %2752 = vmatprep.subr.bf16.mxu0 %v3112_v59  ;;  %v1363_v18 = vadd.f32 1.0, %v3016_v16 }
 0x3a6   : > { %2771 = vmatpush3.bf16.msra.mxu1 %v2972_v36 }
 0x3a7   : > { %3019 = vlog2.f32 %v1363_v18  ;;  %2772 = vmatprep.subr.bf16.mxu1 %v3112_v59 }
 0x3a8   : > { %2753 = vmatpush3.bf16.msra.mxu0 %v2965_v13  ;;  %v3018_v17 = vpop.eup %3017 }
 0x3a9   : > { %2754 = vmatprep.subr.bf16.mxu0 %v3112_v59  ;;  %v1364_v19 = vadd.f32 1.0, %v3018_v17 }
 0x3aa   : > { %2773 = vmatpush3.bf16.msra.mxu1 %v2973_v37 }
 0x3ab   : > { %3021 = vlog2.f32 %v1364_v19  ;;  %2774 = vmatprep.subr.bf16.mxu1 %v3112_v59 }
 0x3ac   : > { %2755 = vmatpush3.bf16.msra.mxu0 %v2966_v14  ;;  %v2483_v14 = vld [vmem:[%s3739_s10] ss:$0 sm:$0xff] }
 0x3ad   : > { %2780 = vmatprep.subr.bf16.mxu0 %v3112_v59 }
 0x3ae   : > { %2775 = vmatpush3.bf16.msra.mxu1 %v2974_v38 }
 0x3af   : > { %2800 = vmatprep.subr.bf16.mxu1 %v3112_v59 }
 0x3b4   : > { %v3020_v21 = vpop.eup %3019 }
 0x3b5   : > { %v1366_v24 = vmul.f32 0.6931472, %v3020_v21 }
 0x3b7   : > { %v1369_v26 = vadd.f32 %v1366_v24, %v1353_v20 }
 0x3b8   : > { %v3022_v23 = vpop.eup %3021 }
 0x3b9   : > { %v1368_v25 = vmul.f32 0.6931472, %v3022_v23  ;;  %v2462_v28 = vadd.f32 -0.6931472, %v1369_v26 }
 0x3bb   : > { %v1370_v27 = vadd.f32 %v1368_v25, %v1354_v22 }
 0x3bd   : > { %v2463_v29 = vadd.f32 -0.6931472, %v1370_v27 }
 0x3bf   : > { %v1373_v30 = vpack.c.bf16 %v2463_v29, %v2462_v28 }
 0x3c1   : > { %2757 = vmatmul.mubr.bf16.vlgmr.msra.gmra.mxu0 %v1373_v30 }
 0x3c2   : > { %2796 = vmatprep.mubr.msk.bf16.mxu0 %vm3113_vm6, %v3112_v59  ;;  %2781 = vmatpush3.bf16.msra.mxu0 %v2975_v5 }
 0x3c3   : > { %2782 = vmatprep.subr.bf16.mxu0 %v3112_v59 }
 0x3c6   : > { %2783 = vmatpush3.bf16.msra.mxu0 %v2976_v6 }
 0x3c7   : > { %2784 = vmatprep.subr.bf16.mxu0 %v3112_v59 }
 0x3ca   : > { %2785 = vmatpush3.bf16.msra.mxu0 %v2977_v7 }
 0x3cb   : > { %2786 = vmatprep.subr.bf16.mxu0 %v3112_v59 }
 0x3ce   : > { %2787 = vmatpush3.bf16.msra.mxu0 %v2978_v8 }
 0x3cf   : > { %2788 = vmatprep.subr.bf16.mxu0 %v3112_v59 }
 0x3d2   : > { %2789 = vmatpush3.bf16.msra.mxu0 %v2979_v9 }
 0x3d3   : > { %2790 = vmatprep.subr.bf16.mxu0 %v3112_v59 }
 0x3d6   : > { %2791 = vmatpush3.bf16.msra.mxu0 %v2980_v10 }
 0x3d7   : > { %2792 = vmatprep.subr.bf16.mxu0 %v3112_v59 }
 0x3da   : > { %2793 = vmatpush3.bf16.msra.mxu0 %v2981_v11 }
 0x3db   : > { %2794 = vmatprep.subr.bf16.mxu0 %v3112_v59 }
 0x3de   : > { %2795 = vmatpush3.bf16.msra.mxu0 %v2982_v12 }
 0x3df   : > { %2820 = vmatprep.subr.bf16.mxu0 %v3112_v59 }
 0x481   : > { %v1479_v40 = vpop.f32.mrf.mxu0 }
 0x482   : > { %v1480_v41 = vadd.f32 %v2464_v39, %v1479_v40 }
 0x483   : > { %v2758_v42 = vpop.f32.mrf.mxu0 }
 0x484   : > { %v1488_v43 = vand.u32 2147483647, %v1480_v41  ;;  %v1486_v58 = vmax.f32 %v1480_v41, 0.0  ;;  %v2983_v42 = vld [vmem:[%s3743_s14 + $0x38] sm:$0xff]  }
 0x485   : > { %v1482_v44 = vpop.f32.mrf.mxu0 }
 0x486   : > { %v1490_v45 = vsub.f32 0.0, %v1488_v43  ;;  %v1483_v46 = vadd.f32 %v2464_v39, %v1482_v44  ;;  %v2984_v43 = vld [vmem:[%s3743_s14 + $0x30] sm:$0xff]   ;;  %v2985_v44 = vld [vmem:[%s3743_s14 + $0x28] sm:$0xff]  }
 0x487   : > { %v2759_v47 = vpop.f32.mrf.mxu0 }
 0x488   : > { %v1492_v48 = vmul.f32 1.442695, %v1490_v45  ;;  %v1489_v49 = vand.u32 2147483647, %v1483_v46  ;;  %v1487_v62 = vmax.f32 %v1483_v46, 0.0  ;;  %v2986_v45 = vld [vmem:[%s3743_s14 + $0x20] sm:$0xff]  }
 0x489   : > { %v2987_v46 = vld [vmem:[%s3743_s14 + $0x18] sm:$0xff]   ;;  %v2988_v47 = vld [vmem:[%s3743_s14 + $0x10] sm:$0xff]  }
 0x48a   : > { %3023 = vpow2.f32 %v1492_v48  ;;  %v1491_v50 = vsub.f32 0.0, %v1489_v49  ;;  %v2989_v48 = vld [vmem:[%s3743_s14 + $0x8] sm:$0xff]   ;;  %v2990_v49 = vld [vmem:[%s3743_s14] sm:$0xff]  }
 0x48c   : > { %v1494_v52 = vmul.f32 1.442695, %v1491_v50  ;;  %v2486_v50 = vld [vmem:[%s3742_s13] ss:$0 sm:$0xff] }
 0x48e   : > { %3025 = vpow2.f32 %v1494_v52  ;;  %v1644_v52 = vld [vmem:[%s3762_s21] sm:$0xff] }
 0x497   : > { %v3024_v53 = vpop.eup %3023 }
 0x498   : > { %v1496_v15 = vadd.f32 1.0, %v3024_v53  ;;  %v1652_v53 = vmul.f32 %v2486_v50, %v1644_v52 }
 0x49a   : > { %3027 = vlog2.f32 %v1496_v15  ;;  %v1645_v15 = vld [vmem:[%s3762_s21 + $0x8] sm:$0xff] }
 0x49b   : > { %v3026_v54 = vpop.eup %3025 }
 0x49c   : > { %v1497_v55 = vadd.f32 1.0, %v3026_v54 }
 0x49e   : > { %3029 = vlog2.f32 %v1497_v55  ;;  %v2495_v55 = vld [vmem:[%s3741_s12] ss:$0 sm:$0xff] }
 0x4a7   : > { %v3028_v56 = vpop.eup %3027 }
 0x4a8   : > { %v1499_v57 = vmul.f32 0.6931472, %v3028_v56 }
 0x4aa   : > { %v1502_v61 = vadd.f32 %v1499_v57, %v1486_v58  ;;  %v1653_v57 = vmul.f32 %v2486_v50, %v1645_v15 }
 0x4ab   : > { %v3030_v60 = vpop.eup %3029 }
 0x4ac   : > { %v1501_v63 = vmul.f32 0.6931472, %v3030_v60  ;;  %v2473_v0 = vadd.f32 -0.6931472, %v1502_v61 }
 0x4ae   : > { %v1503_v51 = vadd.f32 %v1501_v63, %v1487_v62 }
 0x4b0   : > { %v2474_v1 = vadd.f32 -0.6931472, %v1503_v51 }
 0x4b2   : > { %v1506_v4 = vpack.c.bf16 %v2474_v1, %v2473_v0 }
 0x4b4   : > { %2777 = vmatmul.mubr.bf16.vlgmr.msra.gmra.mxu1 %v1506_v4 }
 0x4b5   : > { %2816 = vmatprep.mubr.msk.bf16.mxu1 %vm3113_vm6, %v3112_v59  ;;  %2801 = vmatpush3.bf16.msra.mxu1 %v2983_v42 }
 0x4b6   : > { %2802 = vmatprep.subr.bf16.mxu1 %v3112_v59 }
 0x4b9   : > { %2803 = vmatpush3.bf16.msra.mxu1 %v2984_v43 }
 0x4ba   : > { %2804 = vmatprep.subr.bf16.mxu1 %v3112_v59 }
 0x4bd   : > { %2805 = vmatpush3.bf16.msra.mxu1 %v2985_v44 }
 0x4be   : > { %2806 = vmatprep.subr.bf16.mxu1 %v3112_v59 }
 0x4c1   : > { %2807 = vmatpush3.bf16.msra.mxu1 %v2986_v45 }
 0x4c2   : > { %2808 = vmatprep.subr.bf16.mxu1 %v3112_v59 }
 0x4c5   : > { %2809 = vmatpush3.bf16.msra.mxu1 %v2987_v46 }
 0x4c6   : > { %2810 = vmatprep.subr.bf16.mxu1 %v3112_v59 }
 0x4c9   : > { %2811 = vmatpush3.bf16.msra.mxu1 %v2988_v47 }
 0x4ca   : > { %2812 = vmatprep.subr.bf16.mxu1 %v3112_v59 }
 0x4cd   : > { %2813 = vmatpush3.bf16.msra.mxu1 %v2989_v48 }
 0x4ce   : > { %2814 = vmatprep.subr.bf16.mxu1 %v3112_v59 }
 0x4d1   : > { %2815 = vmatpush3.bf16.msra.mxu1 %v2990_v49 }
 0x4d2   : > { %2840 = vmatprep.subr.bf16.mxu1 %v3112_v59 }
 0x574   : > { %v1605_v13 = vpop.f32.mrf.mxu1 }
 0x575   : > { %v1612_v16 = vadd.f32 %v1605_v13, %v3433_v2 }
 0x576   : > { %v2778_v17 = vpop.f32.mrf.mxu1 }
 0x577   : > { %v1621_v18 = vadd.f32 %v2483_v14, %v1612_v16 }
 0x578   : > { %v1608_v19 = vpop.f32.mrf.mxu1 }
 0x579   : > { %v1625_v20 = vand.u32 2147483647, %v1621_v18  ;;  %v1613_v21 = vadd.f32 %v1608_v19, %v3435_v3  ;;  %v1623_v34 = vmax.f32 %v1621_v18, 0.0 }
 0x57a   : > { %v2779_v22 = vpop.f32.mrf.mxu1 }
 0x57b   : > { %v1627_v23 = vsub.f32 0.0, %v1625_v20  ;;  %v1622_v24 = vadd.f32 %v2483_v14, %v1613_v21 }
 0x57d   : > { %v1629_v25 = vmul.f32 1.442695, %v1627_v23  ;;  %v1626_v26 = vand.u32 2147483647, %v1622_v24  ;;  %v1624_v36 = vmax.f32 %v1622_v24, 0.0  ;;  %v2991_v24 = vld [vmem:[%s3745_s16 + $0x38] sm:$0xff]  }
 0x57f   : > { %3031 = vpow2.f32 %v1629_v25  ;;  %v1628_v27 = vsub.f32 0.0, %v1626_v26  ;;  %v2992_v25 = vld [vmem:[%s3745_s16 + $0x30] sm:$0xff]   ;;  %v2993_v26 = vld [vmem:[%s3745_s16 + $0x28] sm:$0xff]  }
 0x581   : > { %v1631_v28 = vmul.f32 1.442695, %v1628_v27  ;;  %v2994_v27 = vld [vmem:[%s3745_s16 + $0x20] sm:$0xff]  }
 0x583   : > { %3033 = vpow2.f32 %v1631_v28  ;;  %v2995_v28 = vld [vmem:[%s3745_s16 + $0x18] sm:$0xff]  }
 0x58c   : > { %v3032_v29 = vpop.eup %3031 }
 0x58d   : > { %v1633_v30 = vadd.f32 1.0, %v3032_v29  ;;  %v2996_v29 = vld [vmem:[%s3745_s16 + $0x10] sm:$0xff]  }
 0x58f   : > { %3035 = vlog2.f32 %v1633_v30  ;;  %v2997_v30 = vld [vmem:[%s3745_s16 + $0x8] sm:$0xff]  }
 0x590   : > { %v3034_v31 = vpop.eup %3033 }
 0x591   : > { %v1634_v2 = vadd.f32 1.0, %v3034_v31  ;;  %v2998_v31 = vld [vmem:[%s3745_s16] sm:$0xff]  }
 0x593   : > { %3037 = vlog2.f32 %v1634_v2  ;;  %v2498_v2 = vld [vmem:[%s3744_s15] ss:$0 sm:$0xff] }
 0x59c   : > { %v3036_v32 = vpop.eup %3035 }
 0x59d   : > { %v1636_v33 = vmul.f32 0.6931472, %v3036_v32 }
 0x59f   : > { %v1639_v3 = vadd.f32 %v1636_v33, %v1623_v34 }
 0x5a0   : > { %v3038_v35 = vpop.eup %3037 }
 0x5a1   : > { %v1638_v37 = vmul.f32 0.6931472, %v3038_v35  ;;  %v2484_v39 = vadd.f32 -0.6931472, %v1639_v3 }
 0x5a3   : > { %v1640_v38 = vadd.f32 %v1638_v37, %v1624_v36 }
 0x5a5   : > { %v2485_v40 = vadd.f32 -0.6931472, %v1640_v38 }
 0x5a7   : > { %v1654_v41 = vpack.c.bf16 %v2485_v40, %v2484_v39 }
 0x5a9   : > { %2797 = vmatmul.mubr.bf16.vlgmr.msra.gmra.mxu0 %v1654_v41 }
 0x5aa   : > { %2836 = vmatprep.mubr.msk.bf16.mxu0 %vm3113_vm6, %v3112_v59  ;;  %2821 = vmatpush3.bf16.msra.mxu0 %v2991_v24 }
 0x5ab   : > { %2822 = vmatprep.subr.bf16.mxu0 %v3112_v59 }
 0x5ae   : > { %2823 = vmatpush3.bf16.msra.mxu0 %v2992_v25 }
 0x5af   : > { %2824 = vmatprep.subr.bf16.mxu0 %v3112_v59 }
 0x5b2   : > { %2825 = vmatpush3.bf16.msra.mxu0 %v2993_v26 }
 0x5b3   : > { %2826 = vmatprep.subr.bf16.mxu0 %v3112_v59 }
 0x5b6   : > { %2827 = vmatpush3.bf16.msra.mxu0 %v2994_v27 }
 0x5b7   : > { %2828 = vmatprep.subr.bf16.mxu0 %v3112_v59 }
 0x5ba   : > { %2829 = vmatpush3.bf16.msra.mxu0 %v2995_v28 }
 0x5bb   : > { %2830 = vmatprep.subr.bf16.mxu0 %v3112_v59 }
 0x5be   : > { %2831 = vmatpush3.bf16.msra.mxu0 %v2996_v29 }
 0x5bf   : > { %2832 = vmatprep.subr.bf16.mxu0 %v3112_v59 }
 0x5c2   : > { %2833 = vmatpush3.bf16.msra.mxu0 %v2997_v30 }
 0x5c3   : > { %2834 = vmatprep.subr.bf16.mxu0 %v3112_v59 }
 0x5c6   : > { %2835 = vmatpush3.bf16.msra.mxu0 %v2998_v31 }
 0x5c7   : > { %2860 = vmatprep.subr.bf16.mxu0 %v3112_v59 }
 0x669   : > { %v1753_v54 = vpop.f32.mrf.mxu0 }
 0x66a   : > { %v1760_v56 = vadd.f32 %v1753_v54, %v1652_v53 }
 0x66b   : > { %v2798_v58 = vpop.f32.mrf.mxu0 }
 0x66c   : > { %v3584_v60 = vadd.f32 %v2495_v55, %v1760_v56  ;;  %v2999_v58 = vld [vmem:[%s3743_s14 + $0x78] sm:$0xff]  }
 0x66d   : > { %v1756_v61 = vpop.f32.mrf.mxu0 }
 0x66e   : > { %v1773_v62 = vand.u32 2147483647, %v3584_v60  ;;  %v1761_v63 = vadd.f32 %v1756_v61, %v1653_v57  ;;  %v1771_v14 = vmax.f32 %v3584_v60, 0.0  ;;  %v3000_v61 = vld [vmem:[%s3743_s14 + $0x70] sm:$0xff]  }
 0x66f   : > { %v2799_v51 = vpop.f32.mrf.mxu0 }
 0x670   : > { %v1775_v0 = vsub.f32 0.0, %v1773_v62  ;;  %v3587_v1 = vadd.f32 %v2495_v55, %v1761_v63  ;;  %v3001_v62 = vld [vmem:[%s3743_s14 + $0x68] sm:$0xff]   ;;  %v3002_v63 = vld [vmem:[%s3743_s14 + $0x60] sm:$0xff]   ;;  %v3003_v51 = vld [vmem:[%s3743_s14 + $0x58] sm:$0xff]  }
 0x672   : > { %v1777_v4 = vmul.f32 1.442695, %v1775_v0  ;;  %v1774_v5 = vand.u32 2147483647, %v3587_v1  ;;  %v1772_v18 = vmax.f32 %v3587_v1, 0.0  ;;  %v3004_v0 = vld [vmem:[%s3743_s14 + $0x50] sm:$0xff]  }
 0x674   : > { %3039 = vpow2.f32 %v1777_v4  ;;  %v1776_v6 = vsub.f32 0.0, %v1774_v5  ;;  %v3005_v4 = vld [vmem:[%s3743_s14 + $0x48] sm:$0xff]   ;;  %v3006_v5 = vld [vmem:[%s3743_s14 + $0x40] sm:$0xff]  }
 0x676   : > { %v1779_v7 = vmul.f32 1.442695, %v1776_v6 }
 0x678   : > { %3041 = vpow2.f32 %v1779_v7  ;;  %v2517_v7 = vld [vmem:[%s3763_s20] ss:$0 sm:$0xff] }
 0x681   : > { %v3040_v8 = vpop.eup %3039 }
 0x682   : > { %v1781_v9 = vadd.f32 1.0, %v3040_v8 }
 0x684   : > { %3043 = vlog2.f32 %v1781_v9 }
 0x685   : > { %v3042_v10 = vpop.eup %3041 }
 0x686   : > { %v1782_v11 = vadd.f32 1.0, %v3042_v10 }
 0x688   : > { %3045 = vlog2.f32 %v1782_v11 }
 0x691   : > { %v3044_v12 = vpop.eup %3043 }
 0x692   : > { %v1784_v13 = vmul.f32 0.6931472, %v3044_v12 }
 0x694   : > { %v1787_v17 = vadd.f32 %v1784_v13, %v1771_v14 }
 0x695   : > { %v3046_v16 = vpop.eup %3045 }
 0x696   : > { %v1786_v19 = vmul.f32 0.6931472, %v3046_v16  ;;  %v2496_v21 = vadd.f32 -0.6931472, %v1787_v17 }
 0x698   : > { %v1788_v20 = vadd.f32 %v1786_v19, %v1772_v18 }
 0x69a   : > { %v2497_v22 = vadd.f32 -0.6931472, %v1788_v20 }
 0x69c   : > { %v1791_v23 = vpack.c.bf16 %v2497_v22, %v2496_v21 }
 0x69e   : > { %2817 = vmatmul.mubr.bf16.vlgmr.msra.gmra.mxu1 %v1791_v23 }
 0x69f   : > { %2856 = vmatprep.mubr.msk.bf16.mxu1 %vm3113_vm6, %v3112_v59  ;;  %2841 = vmatpush3.bf16.msra.mxu1 %v2999_v58 }
 0x6a0   : > { %2842 = vmatprep.subr.bf16.mxu1 %v3112_v59 }
 0x6a3   : > { %2843 = vmatpush3.bf16.msra.mxu1 %v3000_v61 }
 0x6a4   : > { %2844 = vmatprep.subr.bf16.mxu1 %v3112_v59 }
 0x6a7   : > { %2845 = vmatpush3.bf16.msra.mxu1 %v3001_v62 }
 0x6a8   : > { %2846 = vmatprep.subr.bf16.mxu1 %v3112_v59 }
 0x6ab   : > { %2847 = vmatpush3.bf16.msra.mxu1 %v3002_v63 }
 0x6ac   : > { %2848 = vmatprep.subr.bf16.mxu1 %v3112_v59 }
 0x6af   : > { %2849 = vmatpush3.bf16.msra.mxu1 %v3003_v51 }
 0x6b0   : > { %2850 = vmatprep.subr.bf16.mxu1 %v3112_v59 }
 0x6b3   : > { %2851 = vmatpush3.bf16.msra.mxu1 %v3004_v0 }
 0x6b4   : > { %2852 = vmatprep.subr.bf16.mxu1 %v3112_v59 }
 0x6b7   : > { %2853 = vmatpush3.bf16.msra.mxu1 %v3005_v4 }
 0x6b8   : > { %2854 = vmatprep.subr.bf16.mxu1 %v3112_v59 }
 0x6bb   : > { %2855 = vmatpush3.bf16.msra.mxu1 %v3006_v5 }
 0x75e   : > { %v1897_v32 = vpop.f32.mrf.mxu1 }
 0x75f   : > { %v1898_v33 = vadd.f32 %v2498_v2, %v1897_v32 }
 0x760   : > { %v2818_v34 = vpop.f32.mrf.mxu1 }
 0x761   : > { %v1906_v35 = vand.u32 2147483647, %v1898_v33  ;;  %v1904_v49 = vmax.f32 %v1898_v33, 0.0  ;;  %v3007_v34 = vld [vmem:[%s3745_s16 + $0x78] sm:$0xff]  }
 0x762   : > { %v1900_v3 = vpop.f32.mrf.mxu1 }
 0x763   : > { %v1908_v36 = vsub.f32 0.0, %v1906_v35  ;;  %v1901_v37 = vadd.f32 %v2498_v2, %v1900_v3  ;;  %v3008_v35 = vld [vmem:[%s3745_s16 + $0x70] sm:$0xff]   ;;  %v3009_v3 = vld [vmem:[%s3745_s16 + $0x68] sm:$0xff]  }
 0x764   : > { %v2819_v38 = vpop.f32.mrf.mxu1 }
 0x765   : > { %v1910_v39 = vmul.f32 1.442695, %v1908_v36  ;;  %v1907_v40 = vand.u32 2147483647, %v1901_v37  ;;  %v1905_v53 = vmax.f32 %v1901_v37, 0.0  ;;  %v3010_v36 = vld [vmem:[%s3745_s16 + $0x60] sm:$0xff]  }
 0x766   : > { %v3011_v37 = vld [vmem:[%s3745_s16 + $0x58] sm:$0xff]   ;;  %v3012_v38 = vld [vmem:[%s3745_s16 + $0x50] sm:$0xff]  }
 0x767   : > { %3047 = vpow2.f32 %v1910_v39  ;;  %v1909_v41 = vsub.f32 0.0, %v1907_v40  ;;  %v3013_v39 = vld [vmem:[%s3745_s16 + $0x48] sm:$0xff]   ;;  %v3014_v40 = vld [vmem:[%s3745_s16 + $0x40] sm:$0xff]  }
 0x769   : > { %v1912_v42 = vmul.f32 1.442695, %v1909_v41  ;;  %v2537_v41 = vld [vmem:[%s3744_s15 + $0x1] ss:$0 sm:$0xff] }
 0x76b   : > { %3049 = vpow2.f32 %v1912_v42 }
 0x774   : > { %v3048_v43 = vpop.eup %3047 }
 0x775   : > { %v1914_v44 = vadd.f32 1.0, %v3048_v43 }
 0x777   : > { %3051 = vlog2.f32 %v1914_v44 }
 0x778   : > { %v3050_v45 = vpop.eup %3049 }
 0x779   : > { %v1915_v46 = vadd.f32 1.0, %v3050_v45 }
 0x77b   : > { %3053 = vlog2.f32 %v1915_v46 }
 0x784   : > { %v3052_v47 = vpop.eup %3051 }
 0x785   : > { %v1917_v48 = vmul.f32 0.6931472, %v3052_v47 }
 0x787   : > { %v1920_v52 = vadd.f32 %v1917_v48, %v1904_v49 }
 0x788   : > { %v3054_v50 = vpop.eup %3053 }
 0x789   : > { %v1919_v15 = vmul.f32 0.6931472, %v3054_v50  ;;  %v2507_v55 = vadd.f32 -0.6931472, %v1920_v52 }
 0x78b   : > { %v1921_v54 = vadd.f32 %v1919_v15, %v1905_v53 }
 0x78d   : > { %v2508_v56 = vadd.f32 -0.6931472, %v1921_v54 }
 0x78f   : > { %v1924_v57 = vpack.c.bf16 %v2508_v56, %v2507_v55 }
 0x791   : > { %2837 = vmatmul.mubr.bf16.vlgmr.msra.gmra.mxu0 %v1924_v57 }
 0x792   : > { %2876 = vmatprep.mubr.msk.bf16.mxu0 %vm3113_vm6, %v3112_v59  ;;  %2861 = vmatpush3.bf16.msra.mxu0 %v3007_v34 }
 0x793   : > { %2862 = vmatprep.subr.bf16.mxu0 %v3112_v59 }
 0x796   : > { %2863 = vmatpush3.bf16.msra.mxu0 %v3008_v35 }
 0x797   : > { %2864 = vmatprep.subr.bf16.mxu0 %v3112_v59 }
 0x79a   : > { %2865 = vmatpush3.bf16.msra.mxu0 %v3009_v3 }
 0x79b   : > { %2866 = vmatprep.subr.bf16.mxu0 %v3112_v59 }
 0x79e   : > { %2867 = vmatpush3.bf16.msra.mxu0 %v3010_v36 }
 0x79f   : > { %2868 = vmatprep.subr.bf16.mxu0 %v3112_v59 }
 0x7a2   : > { %2869 = vmatpush3.bf16.msra.mxu0 %v3011_v37 }
 0x7a3   : > { %2870 = vmatprep.subr.bf16.mxu0 %v3112_v59 }
 0x7a6   : > { %2871 = vmatpush3.bf16.msra.mxu0 %v3012_v38 }
 0x7a7   : > { %2872 = vmatprep.subr.bf16.mxu0 %v3112_v59 }
 0x7aa   : > { %2873 = vmatpush3.bf16.msra.mxu0 %v3013_v39 }
 0x7ab   : > { %2874 = vmatprep.subr.bf16.mxu0 %v3112_v59 }
 0x7ae   : > { %2875 = vmatpush3.bf16.msra.mxu0 %v3014_v40 }
 0x851   : > { %v2023_v6 = vpop.f32.mrf.mxu0 }
 0x852   : > { %v2030_v8 = vadd.f32 %v2023_v6, %v3584_v60 }
 0x853   : > { %v2838_v9 = vpop.f32.mrf.mxu0 }
 0x854   : > { %v3666_v10 = vadd.f32 %v2517_v7, %v2030_v8  ;;  %v2573_v9 = vld [vmem:[%s3763_s20 + $0x1] ss:$0 sm:$0xff] }
 0x855   : > { %v2026_v11 = vpop.f32.mrf.mxu0 }
 0x856   : > { %v2043_v12 = vand.u32 2147483647, %v3666_v10  ;;  %v2031_v13 = vadd.f32 %v2026_v11, %v3587_v1  ;;  %v2041_v1 = vmax.f32 %v3666_v10, 0.0 }
 0x857   : > { %v2839_v14 = vpop.f32.mrf.mxu0 }
 0x858   : > { %v2045_v16 = vsub.f32 0.0, %v2043_v12  ;;  %v3670_v17 = vadd.f32 %v2517_v7, %v2031_v13 }
 0x85a   : > { %v2047_v18 = vmul.f32 1.442695, %v2045_v16  ;;  %v2044_v19 = vand.u32 2147483647, %v3670_v17  ;;  %v2042_v29 = vmax.f32 %v3670_v17, 0.0 }
 0x85c   : > { %3055 = vpow2.f32 %v2047_v18  ;;  %v2046_v20 = vsub.f32 0.0, %v2044_v19 }
 0x85e   : > { %v2049_v21 = vmul.f32 1.442695, %v2046_v20 }
 0x860   : > { %3057 = vpow2.f32 %v2049_v21 }
 0x869   : > { %v3056_v60 = vpop.eup %3055 }
 0x86a   : > { %v2051_v22 = vadd.f32 1.0, %v3056_v60 }
 0x86c   : > { %3059 = vlog2.f32 %v2051_v22 }
 0x86d   : > { %v3058_v23 = vpop.eup %3057 }
 0x86e   : > { %v2052_v24 = vadd.f32 1.0, %v3058_v23 }
 0x870   : > { %3061 = vlog2.f32 %v2052_v24 }
 0x879   : > { %v3060_v25 = vpop.eup %3059 }
 0x87a   : > { %v2054_v26 = vmul.f32 0.6931472, %v3060_v25 }
 0x87c   : > { %v2057_v28 = vadd.f32 %v2054_v26, %v2041_v1 }
 0x87d   : > { %v3062_v27 = vpop.eup %3061 }
 0x87e   : > { %v2056_v30 = vmul.f32 0.6931472, %v3062_v27  ;;  %v2518_v2 = vadd.f32 -0.6931472, %v2057_v28 }
 0x880   : > { %v2058_v31 = vadd.f32 %v2056_v30, %v2042_v29 }
 0x882   : > { %v2519_v32 = vadd.f32 -0.6931472, %v2058_v31 }
 0x884   : > { %v2061_v33 = vpack.c.bf16 %v2519_v32, %v2518_v2 }
 0x886   : > { %2857 = vmatmul.mubr.bf16.vlgmr.msra.gmra.mxu1 %v2061_v33 }
 0x946   : > { %v2169_v42 = vpop.f32.mrf.mxu1 }
 0x947   : > { %v2170_v43 = vadd.f32 %v2537_v41, %v2169_v42 }
 0x948   : > { %v2858_v44 = vpop.f32.mrf.mxu1 }
 0x949   : > { %v2178_v45 = vand.u32 2147483647, %v2170_v43  ;;  %v2176_v61 = vmax.f32 %v2170_v43, 0.0 }
 0x94a   : > { %v2172_v46 = vpop.f32.mrf.mxu1 }
 0x94b   : > { %v2180_v47 = vsub.f32 0.0, %v2178_v45  ;;  %v2173_v48 = vadd.f32 %v2537_v41, %v2172_v46 }
 0x94c   : > { %v2859_v49 = vpop.f32.mrf.mxu1 }
 0x94d   : > { %v2182_v50 = vmul.f32 1.442695, %v2180_v47  ;;  %v2179_v52 = vand.u32 2147483647, %v2173_v48  ;;  %v2177_v51 = vmax.f32 %v2173_v48, 0.0 }
 0x94f   : > { %3063 = vpow2.f32 %v2182_v50  ;;  %v2181_v59 = vsub.f32 0.0, %v2179_v52 }
 0x951   : > { %v2184_v53 = vmul.f32 1.442695, %v2181_v59 }
 0x953   : > { %3065 = vpow2.f32 %v2184_v53 }
 0x95c   : > { %v3064_v15 = vpop.eup %3063 }
 0x95d   : > { %v2186_v54 = vadd.f32 1.0, %v3064_v15 }
 0x95f   : > { %3067 = vlog2.f32 %v2186_v54 }
 0x960   : > { %v3066_v55 = vpop.eup %3065 }
 0x961   : > { %v2187_v56 = vadd.f32 1.0, %v3066_v55 }
 0x963   : > { %3069 = vlog2.f32 %v2187_v56 }
 0x96c   : > { %v3068_v57 = vpop.eup %3067 }
 0x96d   : > { %v2189_v58 = vmul.f32 0.6931472, %v3068_v57 }
 0x96f   : > { %v2192_v63 = vadd.f32 %v2189_v58, %v2176_v61 }
 0x970   : > { %v3070_v62 = vpop.eup %3069 }
 0x971   : > { %v2191_v0 = vmul.f32 0.6931472, %v3070_v62  ;;  %v2546_v5 = vadd.f32 -0.6931472, %v2192_v63 }
 0x973   : > { %v2193_v4 = vadd.f32 %v2191_v0, %v2177_v51 }
 0x975   : > { %v2547_v6 = vadd.f32 -0.6931472, %v2193_v4 }
 0x977   : > { %v2196_v7 = vpack.c.bf16 %v2547_v6, %v2546_v5 }
 0x979   : > { %2877 = vmatmul.mubr.bf16.vlgmr.msra.gmra.mxu0 %v2196_v7 }
 0xa39   : > { %v2296_v8 = vpop.f32.mrf.mxu0 }
 0xa3a   : > { %v2303_v11 = vadd.f32 %v2296_v8, %v3666_v10 }
 0xa3b   : > { %v2878_v12 = vpop.f32.mrf.mxu0 }
 0xa3c   : > { %v2313_v13 = vadd.f32 %v2573_v9, %v2303_v11 }
 0xa3d   : > { %v2299_v14 = vpop.f32.mrf.mxu0 }
 0xa3e   : > { %2315 = vst [vmem:[#allocation4] sm:$0xff] %v2313_v13  ;;  %v2304_v16 = vadd.f32 %v2299_v14, %v3670_v17 }
 0xa3f   : > { %v2879_v18 = vpop.f32.mrf.mxu0 }
 0xa40   : > { %v2314_v19 = vadd.f32 %v2573_v9, %v2304_v16 }
 0xa42   : > { %2316 = vst [vmem:[#allocation4 + $0x8] sm:$0xff] %v2314_v19 }
 0xa43 PF: > { %p2884_p7 = scmp.eq.s32.totalorder %s3218_s28, 2  ;;  %s3114_s1 = smov [#allocation4]  }
 0xa44   : > { %s2323_s21 = sshll.u32 %s3114_s1, 4  ;;  %s2324_s21 = int_to_ptr.vmem [resolvable:$true] %s2323_s21 }
 0xa45   : > { %s3071_s22 = scalar_lea.vmem %s2324_s21, 256  ;;  %p3078_p11 = scmp.lt.s32.totalorder %s2324_s21, %s2324_s21 }
 0xa46   : > { %p3072_p8 = scmp.ne.s32.totalorder %s2324_s21, %s3071_s22  ;;  %p3079_p12 = scmp.lt.s32.totalorder %s3071_s22, %s3071_s22 }
 0xa48   : > { %p3073_p9 = pnand %p3072_p8, %p2884_p7  ;;  %p3080_p13 = por %p3079_p12, %p3078_p11 }
 0xa4a   : > { %p3074_p10 = pneg %p3073_p9 }
 0xa4c   : > { %p3081_p0 = pnand %p3080_p13, %p3074_p10 }
 0xa4e   : > { %3084 = shalt.err (!%p3081_p0)
}
 0xa4f   : > { %s3115_s2 = smov 128   ;;  %s3116_s17 = smov 8  }
 0xa50   : > { %s3764_s24 = sld [smem:[#allocation12_spill]] }
 0xa56   : > { %2881 = dma.vmem_to_hbm [thread:$0]  (%p2884_p7), %s2324_s21, 256, %s3764_s24, [#allocation5], %s3115_s2, %s3115_s2, %s3116_s17  }
 0xa57   : > { %3100 = dma.done.wait (%p2884_p7), [#allocation5], 256  }
 0xa58   : > { %3102 = vsyncadd (%p2884_p7), [#allocation5], 4294967040 }
 0xa59 PF: > { %s3765_s23 = sld [smem:[#allocation7_spill]] }
 0xa5f   : > { %s29_s27 = sadd.s32 1, %s3765_s23  }
 0xa60   : > { %p26_p1 = scmp.ge.s32.totalorder %s29_s27, 5  }
 0xa62   :  { %28 = sbr.rel (!%p26_p1) target bundleno = 7 (0x7), region = 137 }
 0xa67   :  { %2339 = vsyncpa [#allocation5], 1 }
 0xa68   :  { %2341 = vsyncpa [#allocation5 + $0x1], 1 }

</bundles_post_ra>
